<compile_context>
chip_gen: v6e
topology: v6e:2x2x1
jax: 0.10.0
libtpu: 0.0.40
codegen_flags: <defaults>
</compile_context>

<pallas_src>
import functools

import numpy as np
import jax
import jax.numpy as jnp
from jax.experimental import pallas as pl
from jax.experimental.pallas import tpu as pltpu

HEADS = 4
BN_EPS = 1e-5


# ----------------------------- fused Pallas kernel -----------------------------

def _seg_gnn_kernel(desc_ref,
                    wbig_ref, bbig_ref,   # fused x-projection  [wq*scale | wk | wv | w1a]  (D, 5D)
                    wmsg_ref,             # merge Conv1d folded into MLP conv1 message half (D, 2D)
                    w2_ref, b2_ref,       # MLP conv2 (2D, D)
                    out_ref,
                    x_scr,
                    *, compute_dtype):
    l = pl.program_id(1)
    n_layers = pl.num_programs(1)

    # Load desc for this batch element into the resident VMEM state on the first layer.
    @pl.when(l == 0)
    def _init():
        x_scr[...] = desc_ref[0].astype(jnp.float32)

    x = x_scr[...]                                   # (N, D) f32, resident across layers
    N, D = x.shape
    H = HEADS
    hd = D // H
    cd = compute_dtype

    # One wide matmul produces q | k | v | (x-half of MLP conv1). All biases pre-folded.
    proj = jnp.dot(x.astype(cd), wbig_ref[0].astype(cd),
                   preferred_element_type=jnp.float32) + bbig_ref[0]          # (N, 5D)
    q = proj[:, :D]
    k = proj[:, D:2 * D]
    v = proj[:, 2 * D:3 * D]
    x1 = proj[:, 3 * D:]                             # (N, 2D): x @ w1a + b1 + bm @ w1b

    # Head-major channel layout (c = h*hd + d, via wrapper weight permutation):
    # the head split is a contiguous reshape — no stride-H lane interleave transposes.
    qh = q.reshape(N, H, hd)
    kh = k.reshape(N, H, hd)
    vh = v.reshape(N, H, hd)

    scores = jnp.einsum("nhd,mhd->hnm", qh.astype(cd), kh.astype(cd),
                        preferred_element_type=jnp.float32)          # (H, N, N)
    scores = scores - jnp.max(scores, axis=-1, keepdims=True)
    e = jnp.exp(scores)
    denom = jnp.sum(e, axis=-1, keepdims=True)
    # Exact normalization keeps bit-tight parity with the f32 reference;
    # pl.reciprocal(denom, approx=True) is a further free EUP-slot option.
    prob = e / denom                                                  # softmax over source nodes

    msg = jnp.einsum("hnm,mhd->nhd", prob.astype(cd), vh.astype(cd),
                     preferred_element_type=jnp.float32).reshape(N, D)

    # MLP([2D, 2D, D]) on cat([x, message]): concat + merge conv eliminated by weight folding.
    h1 = x1 + jnp.dot(msg.astype(cd), wmsg_ref[0].astype(cd),
                      preferred_element_type=jnp.float32)
    h1 = jnp.maximum(h1, 0.0)                        # inference BN pre-folded; ReLU
    delta = jnp.dot(h1.astype(cd), w2_ref[0].astype(cd),
                    preferred_element_type=jnp.float32) + b2_ref[0]

    x_new = x + delta                                # SegGNN residual
    x_scr[...] = x_new

    # Single HBM writeback per batch element, after the last layer.
    @pl.when(l == n_layers - 1)
    def _finalize():
        out_ref[0] = x_new.astype(out_ref.dtype)


# ----------------------------- wrapper: weight folding + pallas_call -----------------------------

def _fold_and_permute(p, D):
    """Exact wrapper-time preprocessing (float64): head-major permutation, scale folding,
    BN folding, merge-conv folding, qkv/w1a fusion. Returns kernel-order weight tuple."""
    H, hd = HEADS, D // HEADS
    # New channel c' = h*hd + d  <-  old channel c = d*H + h  (PyTorch view(b, hd, H, n)).
    perm = np.arange(D).reshape(hd, H).T.reshape(-1)
    scale = 1.0 / np.sqrt(np.float64(hd))
    f64 = lambda a: np.asarray(a, dtype=np.float64)

    wq = f64(p["wq"])[:, perm] * scale
    bq = f64(p["bq"])[:, perm] * scale
    wk = f64(p["wk"])[:, perm]
    bk = f64(p["bk"])[:, perm]
    wv = f64(p["wv"])[:, perm]
    bv = f64(p["bv"])[:, perm]
    wm = f64(p["wm"])[perm, :]                       # message arrives head-major -> permute rows
    bm = f64(p["bm"])

    # Inference BatchNorm1d (running_mean=0, running_var=1) folded into conv1.
    bn_scale = f64(p["g1"]) / np.sqrt(1.0 + BN_EPS)  # (1, 2D)
    w1 = f64(p["w1"]) * bn_scale
    b1 = f64(p["b1"]) * bn_scale + f64(p["be1"])
    w1a, w1b = w1[:D, :], w1[D:, :]                  # cat([x, message]) -> split weight

    wmsg = wm @ w1b                                  # merge conv folded into conv1 (D, 2D)
    b_all = b1 + bm @ w1b                            # (1, 2D)

    wbig = np.concatenate([wq, wk, wv, w1a], axis=1)        # (D, 5D)
    bbig = np.concatenate([bq, bk, bv, b_all], axis=1)      # (1, 5D)

    to32 = lambda a: jnp.asarray(a, dtype=jnp.float32)
    return tuple(to32(a) for a in (wbig, bbig, wmsg, f64(p["w2"]), f64(p["b2"])))


def seg_gnn(desc, layer_params, *, compute_dtype=jnp.float32):
    """Fused SegGNN forward: one pallas_call for all layers and the whole batch."""
    B, N, D = desc.shape
    L = len(layer_params)
    assert D % HEADS == 0

    folded = [_fold_and_permute(p, D) for p in layer_params]
    stacked = [jnp.stack(ws, axis=0) for ws in zip(*folded)]   # each: (L, ...)

    def w_spec(a):
        return pl.BlockSpec((1,) + a.shape[1:], lambda b, l: (l, 0, 0))

    in_specs = ([pl.BlockSpec((1, N, D), lambda b, l: (b, 0, 0))]
                + [w_spec(a) for a in stacked])

    kernel = functools.partial(_seg_gnn_kernel, compute_dtype=compute_dtype)

    return pl.pallas_call(
        kernel,
        out_shape=jax.ShapeDtypeStruct((B, N, D), desc.dtype),
        grid=(B, L),
        in_specs=in_specs,
        out_specs=pl.BlockSpec((1, N, D), lambda b, l: (b, 0, 0)),
        scratch_shapes=[pltpu.VMEM((N, D), jnp.float32)],
        compiler_params=pltpu.CompilerParams(
            dimension_semantics=("parallel", "arbitrary")),
    )(desc, *stacked)


# ----------------------------- pure-JAX reference -----------------------------

def _ref_layer(x, p):
    B, N, D = x.shape
    H, hd = HEADS, D // HEADS

    def lin(inp, w, b):
        return inp @ w + b

    q = lin(x, p["wq"], p["bq"])
    k = lin(x, p["wk"], p["bk"])
    v = lin(x, p["wv"], p["bv"])
    qh = q.reshape(B, N, hd, H)
    kh = k.reshape(B, N, hd, H)
    vh = v.reshape(B, N, hd, H)
    scores = jnp.einsum("bndh,bmdh->bhnm", qh, kh) / jnp.sqrt(jnp.float32(hd))
    prob = jax.nn.softmax(scores, axis=-1)
    msg = jnp.einsum("bhnm,bmdh->bndh", prob, vh).reshape(B, N, D)
    message = lin(msg, p["wm"], p["bm"])
    cat = jnp.concatenate([x, message], axis=-1)
    h1 = lin(cat, p["w1"], p["b1"])
    h1 = p["g1"] * h1 / jnp.sqrt(1.0 + BN_EPS) + p["be1"]
    h1 = jnp.maximum(h1, 0.0)
    delta = lin(h1, p["w2"], p["b2"])
    return x + delta


def seg_gnn_ref(desc, layer_params):
    for p in layer_params:
        desc = _ref_layer(desc, p)
    return desc


# ----------------------------- param init -----------------------------

def init_layer_params(key, D):
    ks = jax.random.split(key, 12)
    s = 0.1
    p = {
        "wq": s * jax.random.normal(ks[0], (D, D), jnp.float32),
        "bq": s * jax.random.normal(ks[1], (1, D), jnp.float32),
        "wk": s * jax.random.normal(ks[2], (D, D), jnp.float32),
        "bk": s * jax.random.normal(ks[3], (1, D), jnp.float32),
        "wv": s * jax.random.normal(ks[4], (D, D), jnp.float32),
        "bv": s * jax.random.normal(ks[5], (1, D), jnp.float32),
        "wm": s * jax.random.normal(ks[6], (D, D), jnp.float32),
        "bm": s * jax.random.normal(ks[7], (1, D), jnp.float32),
        "w1": s * jax.random.normal(ks[8], (2 * D, 2 * D), jnp.float32),
        "b1": s * jax.random.normal(ks[9], (1, 2 * D), jnp.float32),
        "g1": 1.0 + s * jax.random.normal(ks[10], (1, 2 * D), jnp.float32),
        "be1": s * jax.random.normal(ks[11], (1, 2 * D), jnp.float32),
        "w2": s * jax.random.normal(jax.random.fold_in(key, 99), (2 * D, D), jnp.float32),
        "b2": jnp.zeros((1, D), jnp.float32),   # nn.init.constant_(mlp[-1].bias, 0.0)
    }
    return p


if __name__ == "__main__":
    B, N, D, n_layers = 2, 64, 32, 2   # feature_dim=32 (divisible by 4 heads), 64 nodes

    root = jax.random.PRNGKey(0)
    kx, kp = jax.random.split(root)
    desc = jax.random.normal(kx, (B, N, D), jnp.float32)
    layer_params = [init_layer_params(jax.random.fold_in(kp, i), D) for i in range(n_layers)]

    out = jax.block_until_ready(seg_gnn(desc, layer_params))
    ref = jax.block_until_ready(seg_gnn_ref(desc, layer_params))

    assert out.shape == (B, N, D)
    assert jnp.allclose(out, ref, rtol=1e-4, atol=1e-4), "Pallas output mismatch vs JAX reference"

    print("KERNEL_OK")
</pallas_src>

<mosaic_0001>
module attributes {stable_mosaic.version = 11 : i64} {
  func.func @_seg_gnn_kernel(%arg0: i32, %arg1: i32, %arg2: memref<1x64x32xf32, #tpu.memory_space<vmem>>, %arg3: memref<1x32x160xf32, #tpu.memory_space<vmem>>, %arg4: memref<1x1x160xf32, #tpu.memory_space<vmem>>, %arg5: memref<1x32x64xf32, #tpu.memory_space<vmem>>, %arg6: memref<1x64x32xf32, #tpu.memory_space<vmem>>, %arg7: memref<1x1x32xf32, #tpu.memory_space<vmem>>, %arg8: memref<1x64x32xf32, #tpu.memory_space<vmem>>, %arg9: memref<64x32xf32, #tpu.memory_space<vmem>>) attributes {dimension_semantics = [#tpu.dimension_semantics<parallel>, #tpu.dimension_semantics<arbitrary>], iteration_bounds = array<i64: 2, 2>, scalar_prefetch = 0 : i64, scratch_operands = 1 : i64, tpu.core_type = #tpu.core_type<tc>, window_params = [{transform_indices = @transform_0, window_bounds = array<i64: 1, 64, 32>}, {transform_indices = @transform_1, window_bounds = array<i64: 1, 32, 160>}, {transform_indices = @transform_2, window_bounds = array<i64: 1, 1, 160>}, {transform_indices = @transform_3, window_bounds = array<i64: 1, 32, 64>}, {transform_indices = @transform_4, window_bounds = array<i64: 1, 64, 32>}, {transform_indices = @transform_5, window_bounds = array<i64: 1, 1, 32>}, {transform_indices = @transform_6, window_bounds = array<i64: 1, 64, 32>}]} {
    %c0_i32 = arith.constant 0 : i32
    %0 = arith.cmpi eq, %arg1, %c0_i32 : i32
    %1 = arith.extui %0 : i1 to i32
    %c0_i32_0 = arith.constant 0 : i32
    %2 = arith.cmpi ne, %1, %c0_i32_0 : i32
    scf.if %2 {
      %c0_27 = arith.constant 0 : index
      %c0_28 = arith.constant 0 : index
      %c0_29 = arith.constant 0 : index
      %49 = vector.load %arg2[%c0_27, %c0_28, %c0_29] : memref<1x64x32xf32, #tpu.memory_space<vmem>>, vector<1x64x32xf32>
      %50 = vector.shape_cast %49 : vector<1x64x32xf32> to vector<64x32xf32>
      %c0_30 = arith.constant 0 : index
      %c0_31 = arith.constant 0 : index
      %51 = vector.load %arg9[%c0_30, %c0_31] : memref<64x32xf32, #tpu.memory_space<vmem>>, vector<64x32xf32>
      tpu.vector_store %arg9[%c0_30, %c0_31], %50 {strides = array<i32>} : memref<64x32xf32, #tpu.memory_space<vmem>>, vector<64x32xf32>,
    } else {
    }
    %c0 = arith.constant 0 : index
    %c0_1 = arith.constant 0 : index
    %3 = vector.load %arg9[%c0, %c0_1] : memref<64x32xf32, #tpu.memory_space<vmem>>, vector<64x32xf32>
    %c0_2 = arith.constant 0 : index
    %c0_3 = arith.constant 0 : index
    %c0_4 = arith.constant 0 : index
    %4 = vector.load %arg3[%c0_2, %c0_3, %c0_4] : memref<1x32x160xf32, #tpu.memory_space<vmem>>, vector<1x32x160xf32>
    %5 = vector.shape_cast %4 : vector<1x32x160xf32> to vector<32x160xf32>
    %cst = arith.constant dense<0.000000e+00> : vector<64x160xf32>
    %6 = tpu.matmul %3, %5, %cst {dimension_numbers = #tpu.dot_dimension_numbers<[1], [0], [0], [1], [0, 0, 1, 1], [], []>} : vector<64x32xf32>, vector<32x160xf32>, vector<64x160xf32> -> vector<64x160xf32>
    %c0_5 = arith.constant 0 : index
    %c0_6 = arith.constant 0 : index
    %c0_7 = arith.constant 0 : index
    %7 = vector.load %arg4[%c0_5, %c0_6, %c0_7] : memref<1x1x160xf32, #tpu.memory_space<vmem>>, vector<1x1x160xf32>
    %8 = vector.shape_cast %7 : vector<1x1x160xf32> to vector<1x160xf32>
    %9 = vector.broadcast %8 : vector<1x160xf32> to vector<64x160xf32>
    %10 = arith.addf %6, %9 : vector<64x160xf32>
    %11 = vector.extract_strided_slice %10 {offsets = [0, 0], sizes = [64, 32], strides = [1, 1]} : vector<64x160xf32> to vector<64x32xf32>
    %12 = vector.extract_strided_slice %10 {offsets = [0, 32], sizes = [64, 32], strides = [1, 1]} : vector<64x160xf32> to vector<64x32xf32>
    %13 = vector.extract_strided_slice %10 {offsets = [0, 64], sizes = [64, 32], strides = [1, 1]} : vector<64x160xf32> to vector<64x32xf32>
    %14 = vector.extract_strided_slice %10 {offsets = [0, 96], sizes = [64, 64], strides = [1, 1]} : vector<64x160xf32> to vector<64x64xf32>
    %15 = vector.shape_cast %11 : vector<64x32xf32> to vector<64x4x8xf32>
    %16 = vector.shape_cast %12 : vector<64x32xf32> to vector<64x4x8xf32>
    %17 = vector.shape_cast %13 : vector<64x32xf32> to vector<64x4x8xf32>
    "tpu.trace_start"() <{level = 10 : i32, message = "nhd,mhd->hnm"}> : () -> ()
    %cst_8 = arith.constant dense<0.000000e+00> : vector<4x64x64xf32>
    %18 = tpu.matmul %15, %16, %cst_8 {dimension_numbers = #tpu.dot_dimension_numbers<[2], [2], [0], [0], [0, 1, 0, 0, 1, 0], [1], [1]>} : vector<64x4x8xf32>, vector<64x4x8xf32>, vector<4x64x64xf32> -> vector<4x64x64xf32>
    "tpu.trace_stop"() : () -> ()
    %cst_9 = arith.constant dense<0xFF800000> : vector<4x64xf32>
    %19 = vector.multi_reduction <maximumf>, %18, %cst_9 [2] : vector<4x64x64xf32> to vector<4x64xf32>
    %20 = vector.shape_cast %19 : vector<4x64xf32> to vector<4x64x1xf32>
    %21 = vector.broadcast %20 : vector<4x64x1xf32> to vector<4x64x64xf32>
    %22 = arith.subf %18, %21 : vector<4x64x64xf32>
    %23 = math.exp %22 : vector<4x64x64xf32>
    %cst_10 = arith.constant dense<0.000000e+00> : vector<4x64xf32>
    %24 = vector.multi_reduction <add>, %23, %cst_10 [2] : vector<4x64x64xf32> to vector<4x64xf32>
    %25 = vector.shape_cast %24 : vector<4x64xf32> to vector<4x64x1xf32>
    %26 = vector.broadcast %25 : vector<4x64x1xf32> to vector<4x64x64xf32>
    %27 = arith.divf %23, %26 : vector<4x64x64xf32>
    "tpu.trace_start"() <{level = 10 : i32, message = "hnm,mhd->nhd"}> : () -> ()
    %cst_11 = arith.constant dense<0.000000e+00> : vector<4x8x64xf32>
    %28 = tpu.matmul %17, %27, %cst_11 {dimension_numbers = #tpu.dot_dimension_numbers<[0], [2], [2], [1], [0, 1, 0, 2, 1, 1], [1], [0]>} : vector<64x4x8xf32>, vector<4x64x64xf32>, vector<4x8x64xf32> -> vector<4x8x64xf32>
    %29 = tpu.transpose %28, [2, 0, 1] : vector<4x8x64xf32> -> vector<64x4x8xf32>
    "tpu.trace_stop"() : () -> ()
    %30 = vector.shape_cast %29 : vector<64x4x8xf32> to vector<64x32xf32>
    %c0_12 = arith.constant 0 : index
    %c0_13 = arith.constant 0 : index
    %c0_14 = arith.constant 0 : index
    %31 = vector.load %arg5[%c0_12, %c0_13, %c0_14] : memref<1x32x64xf32, #tpu.memory_space<vmem>>, vector<1x32x64xf32>
    %32 = vector.shape_cast %31 : vector<1x32x64xf32> to vector<32x64xf32>
    %cst_15 = arith.constant dense<0.000000e+00> : vector<64x64xf32>
    %33 = tpu.matmul %30, %32, %cst_15 {dimension_numbers = #tpu.dot_dimension_numbers<[1], [0], [0], [1], [0, 0, 1, 1], [], []>} : vector<64x32xf32>, vector<32x64xf32>, vector<64x64xf32> -> vector<64x64xf32>
    %34 = arith.addf %14, %33 : vector<64x64xf32>
    %cst_16 = arith.constant 0.000000e+00 : f32
    %35 = vector.broadcast %cst_16 : f32 to vector<64x64xf32>
    %36 = arith.maximumf %34, %35 : vector<64x64xf32>
    %c0_17 = arith.constant 0 : index
    %c0_18 = arith.constant 0 : index
    %c0_19 = arith.constant 0 : index
    %37 = vector.load %arg6[%c0_17, %c0_18, %c0_19] : memref<1x64x32xf32, #tpu.memory_space<vmem>>, vector<1x64x32xf32>
    %38 = vector.shape_cast %37 : vector<1x64x32xf32> to vector<64x32xf32>
    %cst_20 = arith.constant dense<0.000000e+00> : vector<64x32xf32>
    %39 = tpu.matmul %36, %38, %cst_20 {dimension_numbers = #tpu.dot_dimension_numbers<[1], [0], [0], [1], [0, 0, 1, 1], [], []>} : vector<64x64xf32>, vector<64x32xf32>, vector<64x32xf32> -> vector<64x32xf32>
    %c0_21 = arith.constant 0 : index
    %c0_22 = arith.constant 0 : index
    %c0_23 = arith.constant 0 : index
    %40 = vector.load %arg7[%c0_21, %c0_22, %c0_23] : memref<1x1x32xf32, #tpu.memory_space<vmem>>, vector<1x1x32xf32>
    %41 = vector.shape_cast %40 : vector<1x1x32xf32> to vector<1x32xf32>
    %42 = vector.broadcast %41 : vector<1x32xf32> to vector<64x32xf32>
    %43 = arith.addf %39, %42 : vector<64x32xf32>
    %44 = arith.addf %3, %43 : vector<64x32xf32>
    %c0_24 = arith.constant 0 : index
    %c0_25 = arith.constant 0 : index
    %45 = vector.load %arg9[%c0_24, %c0_25] : memref<64x32xf32, #tpu.memory_space<vmem>>, vector<64x32xf32>
    tpu.vector_store %arg9[%c0_24, %c0_25], %44 {strides = array<i32>} : memref<64x32xf32, #tpu.memory_space<vmem>>, vector<64x32xf32>,
    %c1_i32 = arith.constant 1 : i32
    %46 = arith.cmpi eq, %arg1, %c1_i32 : i32
    %47 = arith.extui %46 : i1 to i32
    %c0_i32_26 = arith.constant 0 : i32
    %48 = arith.cmpi ne, %47, %c0_i32_26 : i32
    scf.if %48 {
      %c0_27 = arith.constant 0 : index
      %c0_28 = arith.constant 0 : index
      %c0_29 = arith.constant 0 : index
      %49 = vector.load %arg8[%c0_27, %c0_28, %c0_29] : memref<1x64x32xf32, #tpu.memory_space<vmem>>, vector<1x64x32xf32>
      %50 = vector.shape_cast %49 : vector<1x64x32xf32> to vector<64x32xf32>
      %51 = vector.shape_cast %44 : vector<64x32xf32> to vector<1x64x32xf32>
      tpu.vector_store %arg8[%c0_27, %c0_28, %c0_29], %51 {strides = array<i32>} : memref<1x64x32xf32, #tpu.memory_space<vmem>>, vector<1x64x32xf32>,
    } else {
    }
    return
  }
  func.func @transform_0(%arg0: i32, %arg1: i32) -> (i32, i32, i32) {
    %c0_i32 = arith.constant 0 : i32
    %c0_i32_0 = arith.constant 0 : i32
    %c0_i32_1 = arith.constant 0 : i32
    return %arg0, %c0_i32, %c0_i32_0 : i32, i32, i32
  }
  func.func @transform_1(%arg0: i32, %arg1: i32) -> (i32, i32, i32) {
    %c0_i32 = arith.constant 0 : i32
    %c0_i32_0 = arith.constant 0 : i32
    %c0_i32_1 = arith.constant 0 : i32
    return %arg1, %c0_i32, %c0_i32_0 : i32, i32, i32
  }
  func.func @transform_2(%arg0: i32, %arg1: i32) -> (i32, i32, i32) {
    %c0_i32 = arith.constant 0 : i32
    %c0_i32_0 = arith.constant 0 : i32
    %c0_i32_1 = arith.constant 0 : i32
    return %arg1, %c0_i32, %c0_i32_0 : i32, i32, i32
  }
  func.func @transform_3(%arg0: i32, %arg1: i32) -> (i32, i32, i32) {
    %c0_i32 = arith.constant 0 : i32
    %c0_i32_0 = arith.constant 0 : i32
    %c0_i32_1 = arith.constant 0 : i32
    return %arg1, %c0_i32, %c0_i32_0 : i32, i32, i32
  }
  func.func @transform_4(%arg0: i32, %arg1: i32) -> (i32, i32, i32) {
    %c0_i32 = arith.constant 0 : i32
    %c0_i32_0 = arith.constant 0 : i32
    %c0_i32_1 = arith.constant 0 : i32
    return %arg1, %c0_i32, %c0_i32_0 : i32, i32, i32
  }
  func.func @transform_5(%arg0: i32, %arg1: i32) -> (i32, i32, i32) {
    %c0_i32 = arith.constant 0 : i32
    %c0_i32_0 = arith.constant 0 : i32
    %c0_i32_1 = arith.constant 0 : i32
    return %arg1, %c0_i32, %c0_i32_0 : i32, i32, i32
  }
  func.func @transform_6(%arg0: i32, %arg1: i32) -> (i32, i32, i32) {
    %c0_i32 = arith.constant 0 : i32
    %c0_i32_0 = arith.constant 0 : i32
    %c0_i32_1 = arith.constant 0 : i32
    return %arg0, %c0_i32, %c0_i32_0 : i32, i32, i32
  }
}

</mosaic_0001>

<bundles_post_ra>
// kernel: tpu_custom_call.1
= control target key start
LH: loop header
LB: loop body
LE: loop exit
PB: predicated region body
PF: predicated region fallthrough
CT: control target
= control target key end

     0   :  { %s4850_s21 = smov 0   ;;  %s4852_s22 = smov 0   ;;  %s6385_s0 = inlined_call_operand.vmem [shape: f32[2,64,32], index: 0, kind: input, shape index: {}]   ;;  %s6386_s1 = inlined_call_operand.vmem [shape: f32[2,32,160], index: 1, kind: input, shape index: {}]   ;;  %s6387_s2 = inlined_call_operand.vmem [shape: f32[2,1,160], index: 2, kind: input, shape index: {}]   ;;  %s6388_s3 = inlined_call_operand.vmem [shape: f32[2,32,64], index: 3, kind: input, shape index: {}]   ;;  %s6389_s4 = inlined_call_operand.vmem [shape: f32[2,64,32], index: 4, kind: input, shape index: {}]   ;;  %s6390_s5 = inlined_call_operand.vmem [shape: f32[2,1,32], index: 5, kind: input, shape index: {}]   ;;  %s6391_s6 = inlined_call_operand.vmem [shape: f32[2,64,32], index: 6, kind: output, shape index: {}]  }
   0x1   :  { %6407 = sst [smem:[#allocation38_spill]] %s6385_s0  ;;  %s4854_s23 = smov 0  }
   0x2   :  { %6408 = sst [smem:[#allocation39_spill]] %s6386_s1  ;;  %s4856_s24 = smov 0  }
   0x3   :  { %s4858_s25 = smov 0  }
   0x4 LB: > { %s25_s26 = sadd.s32 1, %s4792_s23  ;;  %s28_s27 = sadd.s32 1, %s4796_s24  ;;  %s4800_s25 = sphi %s4858_s25, %s16_s25   ;;  %s4796_s24 = sphi %s4856_s24, %s6485_s24   ;;  %s4792_s23 = sphi %s4854_s23, %s6484_s23   ;;  %s4788_s22 = sphi %s4852_s22, %s6483_s22   ;;  %s4784_s21 = sphi %s4850_s21, %s6482_s21  }
   0x5   : > { %p26_p0 = scmp.ge.s32.totalorder %s25_s26, 2  ;;  %p4154_p1 = scmp.ge.s32.totalorder %s4800_s25, 1 }
   0x6   : > { %p271_p2 = scmp.lt.s32.totalorder %s4800_s25, 5 }
   0x7   : > { %s6487_s26 = smov (%p26_p0, %s25_s26), 0  ;;  %s6489_s27 = smov (!%p26_p0, %s28_s27), %s4796_s24 }
   0x8   : > { %p272_p3 = pnand %p4154_p1, %p271_p2  ;;  %p30_p4 = scmp.ge.s32.totalorder %s6489_s27, 2 }
   0xa   : > { %s6491_s27 = smov (%p30_p4, %s6489_s27), 0  ;;  %275 = sbr.rel (%p272_p3) target bundleno = 2521 (0x9d9), region = 44 }
   0xb   : > { %6409 = sst [smem:[#allocation3_spill]] %s6491_s27 }
   0xf   : > { %p323_p5 = scmp.lt.s32.totalorder %s4788_s22, 1  ;;  %p328_p6 = scmp.lt.s32.totalorder %s4784_s21, 1 }
  0x10   : > { %s6410_s0 = sld [smem:[#allocation38_spill]]  ;;  %p4166_p7 = scmp.ne.s32.totalorder %s4784_s21, 0 }
  0x11   : > { %s6493_s22 = smov (!%p323_p5, %s4788_s22), 1  ;;  %s6411_s1 = sld [smem:[#allocation39_spill]] }
  0x12   : > { %s4884_s28 = scalar_select %p328_p6, %s4784_s21, 1 }
  0x13   : > { %s4279_s29 = sshll.u32 %s6493_s22, 6 }
  0x14   : > { %s4280_s9 = sshll.u32 %s4884_s28, 6  ;;  %s4159_s13 = sshll.u32 %s4884_s28, 1 }
  0x15   : > { %s4899_s16 = scalar_lea.vmem %s6387_s2, %s4159_s13  ;;  %s4281_s17 = sshll.u32 %s4884_s28, 5 }
  0x16   : > { %s327_s8 = scalar_lea.vmem %s6410_s0, %s4279_s29  ;;  %s4905_s20 = scalar_lea.vmem %s6388_s3, %s4281_s17 }
  0x17   : > { %s4893_s12 = scalar_lea.vmem %s6411_s1, %s4280_s9  ;;  %s4910_s7 = scalar_lea.vmem %s6389_s4, %s4280_s9 }
  0x18   : > { %s349_s0 = scalar_lea.vmem %s6390_s5, %s4884_s28  ;;  %s4919_s13 = scalar_lea.vmem %s6391_s6, %s4279_s29 }
  0x19   : > { %358 = sbr.rel (%p4166_p7) target bundleno = 35 (0x23), region = 48 }
  0x1e   : > { %v359_v0 = vld [vmem:[%s327_s8] sm:$0xff]  ;;  %vm367_vm0 = vcmask 261120   ;;  %v360_v1 = vld [vmem:[%s327_s8 + $0x8] sm:$0xff]  ;;  %v361_v2 = vld [vmem:[%s327_s8 + $0x10] sm:$0xff] }
  0x1f   : > { %368 = vst.msk [vmem:[#allocation2] sm:$0xff] %vm367_vm0, %v359_v0  ;;  %369 = vst.msk [vmem:[#allocation2 + $0x8] sm:$0xff] %vm367_vm0, %v360_v1  ;;  %v362_v3 = vld [vmem:[%s327_s8 + $0x18] sm:$0xff]  ;;  %v363_v4 = vld [vmem:[%s327_s8 + $0x20] sm:$0xff] }
  0x20   : > { %370 = vst.msk [vmem:[#allocation2 + $0x10] sm:$0xff] %vm367_vm0, %v361_v2  ;;  %v364_v5 = vld [vmem:[%s327_s8 + $0x28] sm:$0xff]  ;;  %371 = vst.msk [vmem:[#allocation2 + $0x18] sm:$0xff] %vm367_vm0, %v362_v3  ;;  %v365_v6 = vld [vmem:[%s327_s8 + $0x30] sm:$0xff] }
  0x21   : > { %372 = vst.msk [vmem:[#allocation2 + $0x20] sm:$0xff] %vm367_vm0, %v363_v4  ;;  %373 = vst.msk [vmem:[#allocation2 + $0x28] sm:$0xff] %vm367_vm0, %v364_v5  ;;  %v366_v7 = vld [vmem:[%s327_s8 + $0x38] sm:$0xff] }
  0x22   : > { %374 = vst.msk [vmem:[#allocation2 + $0x30] sm:$0xff] %vm367_vm0, %v365_v6  ;;  %375 = vst.msk [vmem:[#allocation2 + $0x38] sm:$0xff] %vm367_vm0, %v366_v7 }
  0x23 PF: > { %v391_v8 = vld [vmem:[%s4893_s12 + $0x38] sm:$0xff]  ;;  %v390_v9 = vld [vmem:[%s4893_s12 + $0x30] sm:$0xff]  ;;  %v389_v10 = vld [vmem:[%s4893_s12 + $0x28] sm:$0xff]  ;;  %vm404_vm1 = vcmask 261120   ;;  %v6392_v18 = vmov 0.0   ;;  %v394_v25 = vlaneseq  ;;  %vm822_vm2 = vcmask 64512  }
  0x24   : > { %453 = vmatprep.subr.mxu0 %v391_v8  ;;  %4564 = vmatprep.subr.mxu1 %v391_v8  ;;  %v388_v11 = vld [vmem:[%s4893_s12 + $0x20] sm:$0xff]  ;;  %v387_v12 = vld [vmem:[%s4893_s12 + $0x18] sm:$0xff]  ;;  %v386_v13 = vld [vmem:[%s4893_s12 + $0x10] sm:$0xff]  ;;  %s4803_s1 = smov 120   ;;  %s4804_s27 = smov 104   ;;  %vm1307_vm3 = vcmask 523264  }
  0x25   : > { %454 = vmatpush1.msra.mxu0 %v390_v9  ;;  %4568 = vmatpush1.msra.mxu1 %v390_v9  ;;  %v385_v14 = vld [vmem:[%s4893_s12 + $0x8] sm:$0xff]  ;;  %v384_v15 = vld [vmem:[%s4893_s12] sm:$0xff]  ;;  %v4946_v26 = vshrl.u32 %v394_v25, 7  ;;  %s4805_s29 = smov 112   ;;  %s4806_s8 = smov 96   ;;  %vm4808_vm4 = vmmov 0  }
  0x26   : > { %455 = vmatprep.subr.mxu0 %v389_v10  ;;  %4565 = vmatprep.subr.mxu1 %v389_v10  ;;  %v376_v16 = vld [vmem:[#allocation2] sm:$0xff]  ;;  %v377_v19 = vld [vmem:[#allocation2 + $0x8] sm:$0xff]  ;;  %s4807_s9 = smov 64   ;;  %s4811_s12 = smov 8   ;;  %vm3592_vm5 = vcmask 130048   ;;  %vm3601_vm6 = vcmask 195584  }
  0x27   : > { %456 = vmatpush1.msra.mxu0 %v388_v11  ;;  %4569 = vmatpush1.msra.mxu1 %v388_v11  ;;  %v378_v20 = vld [vmem:[#allocation2 + $0x10] sm:$0xff]  ;;  %v379_v21 = vld [vmem:[#allocation2 + $0x18] sm:$0xff]  ;;  %6412 = vst [vmem:[#allocation4_spill] sm:$0xff] %v4946_v26  ;;  %v396_v27 = vsub.s32 0, %v4946_v26  ;;  %v392_v28 = vld [vmem:[%s4899_s16] sm:$0x3] }
  0x28   : > { %457 = vmatprep.subr.mxu0 %v387_v12  ;;  %4566 = vmatprep.subr.mxu1 %v387_v12  ;;  %v380_v22 = vld [vmem:[#allocation2 + $0x20] sm:$0xff]  ;;  %v381_v23 = vld [vmem:[#allocation2 + $0x28] sm:$0xff]  ;;  %s4812_s14 = smov 16   ;;  %s4813_s15 = smov 24  }
  0x29   : > { %458 = vmatpush1.msra.mxu0 %v386_v13  ;;  %4570 = vmatpush1.msra.mxu1 %v386_v13  ;;  %v383_v17 = vld [vmem:[#allocation2 + $0x38] sm:$0xff]  ;;  %v382_v24 = vld [vmem:[#allocation2 + $0x30] sm:$0xff]  ;;  %v397_v29 = vrot.slane %v392_v28, %v396_v27  ;;  %s4814_s17 = smov 32   ;;  %p4276_p8 = scmp.ne.s32.totalorder %s4784_s21, 1 }
  0x2a   : > { %459 = vmatprep.subr.mxu0 %v385_v14  ;;  %4567 = vmatprep.subr.mxu1 %v385_v14 }
  0x2b   : > { %460 = vmatpush1.msra.mxu0 %v384_v15  ;;  %4571 = vmatpush1.msra.mxu1 %v384_v15 }
  0x2c   : > { %493 = vmatprep.mubr.f32.mxu0 %v6392_v18  ;;  %535 = vmatprep.mubr.f32.mxu1 %v6392_v18 }
  0x2d   : > { %4167 = vmatmul.mubr.msk.f32.vlgmr.msra.gmra.mxu0 %vm404_vm1, %v376_v16  ;;  %4174 = vmatmul.mubr.msk.f32.vlgmr.msra.gmra.mxu1 %vm404_vm1, %v383_v17 }
  0x2e   : > { %499 = vmatprep.mubr.f32.mxu0 %v6392_v18 }
  0x31   : > { %4168 = vmatmul.mubr.msk.f32.gmra.mxu0 %vm404_vm1, %v377_v19 }
  0x32   : > { %505 = vmatprep.mubr.f32.mxu0 %v6392_v18 }
  0x35   : > { %4169 = vmatmul.mubr.msk.f32.gmra.mxu0 %vm404_vm1, %v378_v20 }
  0x36   : > { %511 = vmatprep.mubr.f32.mxu0 %v6392_v18 }
  0x39   : > { %4170 = vmatmul.mubr.msk.f32.gmra.mxu0 %vm404_vm1, %v379_v21 }
  0x3a   : > { %517 = vmatprep.mubr.f32.mxu0 %v6392_v18 }
  0x3d   : > { %4171 = vmatmul.mubr.msk.f32.gmra.mxu0 %vm404_vm1, %v380_v22 }
  0x3e   : > { %523 = vmatprep.mubr.f32.mxu0 %v6392_v18 }
  0x41   : > { %4172 = vmatmul.mubr.msk.f32.gmra.mxu0 %vm404_vm1, %v381_v23 }
  0x42   : > { %529 = vmatprep.mubr.f32.mxu0 %v6392_v18 }
  0x45   : > { %4173 = vmatmul.mubr.msk.f32.gmra.mxu0 %vm404_vm1, %v382_v24 }
  0xed   : > { %v495_v30 = vpop.f32.mrf.mxu0  ;;  %v537_v31 = vpop.f32.mrf.mxu1 }
  0xee   : > { %v4950_v32 = vadd.f32 %v495_v30, %v397_v29  ;;  %v4952_v33 = vadd.f32 %v537_v31, %v397_v29 }
  0xef   : > { %v4968_v34 = vpop.f32.mrf.mxu0 }
  0xf0   : > { %6413 = vst [vmem:[#allocation5_spill] sm:$0xff] %v4950_v32  ;;  %6414 = vst [vmem:[#allocation6_spill] sm:$0xff] %v4952_v33  ;;  %564 = vrot.lane.b32.xlu1 %v4952_v33, %s4803_s1  ;;  %550 = vrot.lane.b32.xlu0 %v4950_v32, %s4803_s1 }
  0xf1   : > { %4386 = vmatprep.mubr.msk.f32.mxu1 %vm822_vm2, %v4950_v32  ;;  %6415 = vst [vmem:[#allocation7_spill] sm:$0xff] %v4968_v34  ;;  %v501_v35 = vpop.f32.mrf.mxu0 }
  0xf2   : > { %v4970_v36 = vadd.f32 %v501_v35, %v397_v29 }
  0xf3   : > { %v4976_v37 = vpop.f32.mrf.mxu0 }
  0xf4   : > { %582 = vrot.lane.b32.xlu1 %v4950_v32, %s4804_s27  ;;  %566 = vrot.lane.b32.xlu0 %v4950_v32, %s4805_s29  ;;  %6416 = vst [vmem:[#allocation8_spill] sm:$0xff] %v4970_v36  ;;  %6417 = vst [vmem:[#allocation9_spill] sm:$0xff] %v4976_v37 }
  0xf5   : > { %v507_v38 = vpop.f32.mrf.mxu0 }
  0xf6   : > { %v4982_v39 = vadd.f32 %v507_v38, %v397_v29 }
  0xf7   : > { %v4988_v40 = vpop.f32.mrf.mxu0 }
  0xf8   : > { %596 = vrot.lane.b32.xlu1 %v4952_v33, %s4804_s27  ;;  %598 = vrot.lane.b32.xlu0 %v4950_v32, %s4806_s8  ;;  %6418 = vst [vmem:[#allocation10_spill] sm:$0xff] %v4982_v39  ;;  %6419 = vst [vmem:[#allocation11_spill] sm:$0xff] %v4988_v40 }
  0xf9   : > { %v513_v41 = vpop.f32.mrf.mxu0 }
  0xfa   : > { %v4996_v43 = vadd.f32 %v513_v41, %v397_v29 }
  0xfb   : > { %v4994_v42 = vpop.f32.mrf.mxu0 }
  0xfc   : > { %612 = vrot.lane.b32.xlu1 %v4952_v33, %s4806_s8  ;;  %580 = vrot.lane.b32.xlu0 %v4952_v33, %s4805_s29  ;;  %6420 = vst [vmem:[#allocation12_spill] sm:$0xff] %v4994_v42  ;;  %6421 = vst [vmem:[#allocation13_spill] sm:$0xff] %v4996_v43 }
  0xfd   : > { %v519_v44 = vpop.f32.mrf.mxu0 }
  0xfe   : > { %v5002_v45 = vadd.f32 %v519_v44, %v397_v29 }
  0xff   : > { %v5012_v46 = vpop.f32.mrf.mxu0 }
 0x100   : > { %584 = vrot.lane.b32.xlu1 %v4970_v36, %s4804_s27  ;;  %552 = vrot.lane.b32.xlu0 %v4970_v36, %s4803_s1  ;;  %6422 = vst [vmem:[#allocation14_spill] sm:$0xff] %v5002_v45  ;;  %6423 = vst [vmem:[#allocation15_spill] sm:$0xff] %v5012_v46 }
 0x101   : > { %v525_v47 = vpop.f32.mrf.mxu0 }
 0x102   : > { %v5020_v49 = vadd.f32 %v525_v47, %v397_v29 }
 0x103   : > { %v5018_v48 = vpop.f32.mrf.mxu0 }
 0x104   : > { %600 = vrot.lane.b32.xlu1 %v4970_v36, %s4806_s8  ;;  %568 = vrot.lane.b32.xlu0 %v4970_v36, %s4805_s29  ;;  %6424 = vst [vmem:[#allocation16_spill] sm:$0xff] %v5018_v48  ;;  %6425 = vst [vmem:[#allocation17_spill] sm:$0xff] %v5020_v49 }
 0x105   : > { %v531_v50 = vpop.f32.mrf.mxu0 }
 0x106   : > { %v5026_v51 = vadd.f32 %v531_v50, %v397_v29 }
 0x108   : > { %554 = vrot.lane.b32.xlu1 %v4982_v39, %s4803_s1  ;;  %570 = vrot.lane.b32.xlu0 %v4982_v39, %s4805_s29  ;;  %6426 = vst [vmem:[#allocation18_spill] sm:$0xff] %v5026_v51 }
 0x10c   : > { %586 = vrot.lane.b32.xlu1 %v4982_v39, %s4804_s27  ;;  %602 = vrot.lane.b32.xlu0 %v4982_v39, %s4806_s8 }
 0x110   : > { %556 = vrot.lane.b32.xlu1 %v4996_v43, %s4803_s1  ;;  %572 = vrot.lane.b32.xlu0 %v4996_v43, %s4805_s29 }
 0x114   : > { %588 = vrot.lane.b32.xlu1 %v4996_v43, %s4804_s27  ;;  %558 = vrot.lane.b32.xlu0 %v5002_v45, %s4803_s1 }
 0x118   : > { %604 = vrot.lane.b32.xlu1 %v4996_v43, %s4806_s8  ;;  %574 = vrot.lane.b32.xlu0 %v5002_v45, %s4805_s29 }
 0x11c   : > { %590 = vrot.lane.b32.xlu1 %v5002_v45, %s4804_s27  ;;  %606 = vrot.lane.b32.xlu0 %v5002_v45, %s4806_s8 }
 0x120   : > { %560 = vrot.lane.b32.xlu1 %v5020_v49, %s4803_s1  ;;  %576 = vrot.lane.b32.xlu0 %v5020_v49, %s4805_s29 }
 0x124   : > { %592 = vrot.lane.b32.xlu1 %v5020_v49, %s4804_s27  ;;  %562 = vrot.lane.b32.xlu0 %v5026_v51, %s4803_s1 }
 0x128   : > { %608 = vrot.lane.b32.xlu1 %v5020_v49, %s4806_s8  ;;  %594 = vrot.lane.b32.xlu0 %v5026_v51, %s4804_s27 }
 0x12c   : > { %578 = vrot.lane.b32.xlu1 %v5026_v51, %s4805_s29  ;;  %610 = vrot.lane.b32.xlu0 %v5026_v51, %s4806_s8 }
 0x162   : > { %v5044_v52 = vpop.permute.xlu1 %564  ;;  %v5046_v53 = vpop.permute.xlu0 %550 }
 0x163   : > { %628 = vrot.lane.b32.xlu1 %v5044_v52, %s4806_s8  ;;  %614 = vrot.lane.b32.xlu0 %v5046_v53, %s4806_s8 }
 0x166   : > { %v5052_v54 = vpop.permute.xlu1 %582  ;;  %v5054_v55 = vpop.permute.xlu0 %566 }
 0x167   : > { %4428 = vmatprep.mubr.msk.f32.mxu0 %vm822_vm2, %v5052_v54  ;;  %646 = vrot.lane.b32.xlu1 %v5052_v54, %s4806_s8 }
 0x168   : > { %630 = vrot.lane.b32.xlu0 %v5054_v55, %s4806_s8 }
 0x16a   : > { %v5062_v56 = vpop.permute.xlu1 %596  ;;  %v599_v57 = vpop.permute.xlu0 %598 }
 0x16b   : > { %660 = vrot.lane.b32.xlu1 %v5062_v56, %s4806_s8 }
 0x16e   : > { %v613_v58 = vpop.permute.xlu1 %612  ;;  %v5066_v59 = vpop.permute.xlu0 %580 }
 0x16f   : > { %644 = vrot.lane.b32.xlu0 %v5066_v59, %s4806_s8 }
 0x172   : > { %v5070_v60 = vpop.permute.xlu1 %584  ;;  %v5072_v61 = vpop.permute.xlu0 %552 }
 0x173   : > { %616 = vrot.lane.b32.xlu1 %v5072_v61, %s4806_s8 }
 0x176   : > { %v601_v62 = vpop.permute.xlu1 %600  ;;  %v5076_v63 = vpop.permute.xlu0 %568 }
 0x177   : > { %648 = vrot.lane.b32.xlu1 %v5070_v60, %s4806_s8  ;;  %632 = vrot.lane.b32.xlu0 %v5076_v63, %s4806_s8 }
 0x17a   : > { %v5082_v0 = vpop.permute.xlu1 %554  ;;  %v5084_v1 = vpop.permute.xlu0 %570 }
 0x17b   : > { %618 = vrot.lane.b32.xlu0 %v5082_v0, %s4806_s8 }
 0x17e   : > { %v5088_v2 = vpop.permute.xlu1 %586  ;;  %v603_v3 = vpop.permute.xlu0 %602 }
 0x17f   : > { %650 = vrot.lane.b32.xlu1 %v5088_v2, %s4806_s8  ;;  %634 = vrot.lane.b32.xlu0 %v5084_v1, %s4806_s8 }
 0x182   : > { %v5094_v4 = vpop.permute.xlu1 %556  ;;  %v5096_v5 = vpop.permute.xlu0 %572 }
 0x183   : > { %620 = vrot.lane.b32.xlu1 %v5094_v4, %s4806_s8  ;;  %636 = vrot.lane.b32.xlu0 %v5096_v5, %s4806_s8 }
 0x186   : > { %v5102_v6 = vpop.permute.xlu1 %588  ;;  %v5104_v7 = vpop.permute.xlu0 %558 }
 0x187   : > { %652 = vrot.lane.b32.xlu1 %v5102_v6, %s4806_s8  ;;  %622 = vrot.lane.b32.xlu0 %v5104_v7, %s4806_s8 }
 0x18a   : > { %v605_v8 = vpop.permute.xlu1 %604  ;;  %v5110_v9 = vpop.permute.xlu0 %574 }
 0x18b   : > { %638 = vrot.lane.b32.xlu0 %v5110_v9, %s4806_s8 }
 0x18e   : > { %v5114_v10 = vpop.permute.xlu1 %590  ;;  %v607_v11 = vpop.permute.xlu0 %606 }
 0x18f   : > { %654 = vrot.lane.b32.xlu1 %v5114_v10, %s4806_s8 }
 0x192   : > { %v5118_v12 = vpop.permute.xlu1 %560  ;;  %v5120_v13 = vpop.permute.xlu0 %576 }
 0x193   : > { %624 = vrot.lane.b32.xlu1 %v5118_v12, %s4806_s8  ;;  %640 = vrot.lane.b32.xlu0 %v5120_v13, %s4806_s8 }
 0x196   : > { %v5126_v14 = vpop.permute.xlu1 %592  ;;  %v5128_v15 = vpop.permute.xlu0 %562 }
 0x197   : > { %656 = vrot.lane.b32.xlu1 %v5126_v14, %s4806_s8  ;;  %626 = vrot.lane.b32.xlu0 %v5128_v15, %s4806_s8 }
 0x19a   : > { %v609_v16 = vpop.permute.xlu1 %608  ;;  %v5134_v17 = vpop.permute.xlu0 %594 }
 0x19b   : > { %658 = vrot.lane.b32.xlu1 %v5134_v17, %s4806_s8 }
 0x19e   : > { %v5138_v19 = vpop.permute.xlu1 %578  ;;  %v611_v20 = vpop.permute.xlu0 %610 }
 0x19f   : > { %642 = vrot.lane.b32.xlu0 %v5138_v19, %s4806_s8 }
 0x1bd   : > { %694 = vxpose.xlu0.b32.start [1/8] (short) (narrow) %v599_v57, 8 }
 0x1c1   : > { %695 = vxpose.xlu0.b32.cont [2/8] (short) (narrow) %v601_v62, 8 }
 0x1c5   : > { %696 = vxpose.xlu0.b32.cont [3/8] (short) (narrow) %v603_v3, 8 }
 0x1c9   : > { %697 = vxpose.xlu0.b32.cont [4/8] (short) (narrow) %v605_v8, 8 }
 0x1cd   : > { %698 = vxpose.xlu0.b32.cont [5/8] (short) (narrow) %v607_v11, 8 }
 0x1d1   : > { %699 = vxpose.xlu0.b32.cont [6/8] (short) (narrow) %v609_v16, 8 }
 0x1d5   : > { %v629_v21 = vpop.permute.xlu1 %628  ;;  %700 = vxpose.xlu0.b32.cont [7/8] (short) (narrow) %v611_v20, 8  ;;  %v615_v22 = vpop.permute.xlu0 %614 }
 0x1d6   : > { %726 = vxpose.xlu1.b32.start [1/8] (short) (narrow) %v615_v22, 8 }
 0x1d9   : > { %701 = vxpose.xlu0.b32.end [8/8] (short) (narrow) %v613_v58, 8  ;;  %v647_v23 = vpop.permute.xlu1 %646 }
 0x1da   : > { %v631_v24 = vpop.permute.xlu0 %630 }
 0x1dd   : > { %758 = vxpose.xlu0.b32.start [1/8] (short) (narrow) %v631_v24, 8  ;;  %v661_v25 = vpop.permute.xlu1 %660 }
 0x1e1   : > { %v645_v27 = vpop.permute.xlu0 %644 }
 0x1e5   : > { %v617_v28 = vpop.permute.xlu1 %616 }
 0x1e6   : > { %727 = vxpose.xlu1.b32.cont [2/8] (short) (narrow) %v617_v28, 8 }
 0x1e9   : > { %v633_v29 = vpop.permute.xlu0 %632  ;;  %v649_v30 = vpop.permute.xlu1 %648 }
 0x1ea   : > { %759 = vxpose.xlu0.b32.cont [2/8] (short) (narrow) %v633_v29, 8 }
 0x1ed   : > { %v619_v31 = vpop.permute.xlu0 %618 }
 0x1ee   : > { %728 = vxpose.xlu1.b32.cont [3/8] (short) (narrow) %v619_v31, 8 }
 0x1f1   : > { %v651_v35 = vpop.permute.xlu1 %650  ;;  %v635_v38 = vpop.permute.xlu0 %634 }
 0x1f2   : > { %760 = vxpose.xlu0.b32.cont [3/8] (short) (narrow) %v635_v38, 8 }
 0x1f5   : > { %v621_v41 = vpop.permute.xlu1 %620  ;;  %v637_v44 = vpop.permute.xlu0 %636 }
 0x1f6   : > { %729 = vxpose.xlu1.b32.cont [4/8] (short) (narrow) %v621_v41, 8  ;;  %761 = vxpose.xlu0.b32.cont [4/8] (short) (narrow) %v637_v44, 8 }
 0x1f9   : > { %v623_v47 = vpop.permute.xlu0 %622  ;;  %v653_v50 = vpop.permute.xlu1 %652 }
 0x1fa   : > { %730 = vxpose.xlu1.b32.cont [5/8] (short) (narrow) %v623_v47, 8 }
 0x1fd   : > { %v639_v57 = vpop.permute.xlu0 %638 }
 0x1fe   : > { %762 = vxpose.xlu0.b32.cont [5/8] (short) (narrow) %v639_v57, 8 }
 0x201   : > { %v655_v58 = vpop.permute.xlu1 %654 }
 0x205   : > { %v625_v62 = vpop.permute.xlu1 %624  ;;  %v641_v3 = vpop.permute.xlu0 %640 }
 0x206   : > { %731 = vxpose.xlu1.b32.cont [6/8] (short) (narrow) %v625_v62, 8  ;;  %763 = vxpose.xlu0.b32.cont [6/8] (short) (narrow) %v641_v3, 8 }
 0x209   : > { %v627_v8 = vpop.permute.xlu0 %626  ;;  %v657_v16 = vpop.permute.xlu1 %656 }
 0x20a   : > { %732 = vxpose.xlu1.b32.cont [7/8] (short) (narrow) %v627_v8, 8 }
 0x20d   : > { %v659_v20 = vpop.permute.xlu1 %658 }
 0x20e   : > { %733 = vxpose.xlu1.b32.end [8/8] (short) (narrow) %v629_v21, 8 }
 0x211   : > { %v643_v11 = vpop.permute.xlu0 %642 }
 0x212   : > { %790 = vxpose.xlu1.b32.start [1/8] (short) (narrow) %v647_v23, 8  ;;  %764 = vxpose.xlu0.b32.cont [7/8] (short) (narrow) %v643_v11, 8 }
 0x216   : > { %791 = vxpose.xlu1.b32.cont [2/8] (short) (narrow) %v649_v30, 8  ;;  %765 = vxpose.xlu0.b32.end [8/8] (short) (narrow) %v645_v27, 8 }
 0x21a   : > { %792 = vxpose.xlu1.b32.cont [3/8] (short) (narrow) %v651_v35, 8 }
 0x21e   : > { %793 = vxpose.xlu1.b32.cont [4/8] (short) (narrow) %v653_v50, 8 }
 0x222   : > { %794 = vxpose.xlu1.b32.cont [5/8] (short) (narrow) %v655_v58, 8  ;;  %v5334_v58 = vpop.f32.mrf.mxu0 }
 0x223   : > { %6429 = vst [vmem:[#allocation21_spill] sm:$0xff] %v5334_v58 }
 0x226   : > { %795 = vxpose.xlu1.b32.cont [6/8] (short) (narrow) %v657_v16, 8 }
 0x22a   : > { %796 = vxpose.xlu1.b32.cont [7/8] (short) (narrow) %v659_v20, 8 }
 0x22e   : > { %797 = vxpose.xlu1.b32.end [8/8] (short) (narrow) %v661_v25, 8 }
 0x239   : > { %v710_v22 = vpop.trf.xlu0 }
 0x23a   : > { %4384 = vmatprep.subr.mxu1 %v710_v22 }
 0x23b   : > { %4385 = vmatpush3.msra.mxu1 %v710_v22 }
 0x23c   : > { %4387 = vmatmul.mubr.msk.f32.vlgmr.msra.gmra.mxu1 %vm822_vm2, %v4970_v36 }
 0x23d   : > { %4389 = vmatprep.mubr.msk.f32.mxu1 %vm822_vm2, %v4982_v39 }
 0x23f   : > { %1676 = vrot.lane.b32.xlu0 %v5046_v53, %s4807_s9 }
 0x240   : > { %4390 = vmatmul.mubr.msk.f32.gmra.mxu1 %vm822_vm2, %v4996_v43 }
 0x241   : > { %4392 = vmatprep.mubr.msk.f32.mxu1 %vm822_vm2, %v5002_v45 }
 0x243   : > { %1664 = vrot.lane.b32.xlu0 %v4982_v39, %s4807_s9 }
 0x244   : > { %4393 = vmatmul.mubr.msk.f32.gmra.mxu1 %vm822_vm2, %v5020_v49 }
 0x245   : > { %4395 = vmatprep.mubr.msk.f32.mxu1 %vm822_vm2, %v5026_v51 }
 0x247   : > { %1666 = vrot.lane.b32.xlu0 %v4996_v43, %s4807_s9 }
 0x248   : > { %4396 = vmatmul.mubr.msk.f32.gmra.mxu1 %vm822_vm2, %v4952_v33 }
 0x249   : > { %4400 = vmatprep.mubr.msk.f32.mxu1 %vm822_vm2, %v5046_v53 }
 0x24b   : > { %1668 = vrot.lane.b32.xlu0 %v5002_v45, %s4807_s9 }
 0x24c   : > { %1660 = vrot.lane.b32.xlu1 %v4950_v32, %s4807_s9 }
 0x24f   : > { %1670 = vrot.lane.b32.xlu0 %v5020_v49, %s4807_s9 }
 0x250   : > { %1662 = vrot.lane.b32.xlu1 %v4970_v36, %s4807_s9 }
 0x253   : > { %1672 = vrot.lane.b32.xlu0 %v5026_v51, %s4807_s9 }
 0x254   : > { %1678 = vrot.lane.b32.xlu1 %v5072_v61, %s4807_s9 }
 0x257   : > { %1674 = vrot.lane.b32.xlu0 %v4952_v33, %s4807_s9 }
 0x258   : > { %1680 = vrot.lane.b32.xlu1 %v5082_v0, %s4807_s9 }
 0x25b   : > { %1708 = vrot.lane.b32.xlu0 %v5052_v54, %s4807_s9 }
 0x25c   : > { %1682 = vrot.lane.b32.xlu1 %v5094_v4, %s4807_s9 }
 0x25f   : > { %1696 = vrot.lane.b32.xlu0 %v5084_v1, %s4807_s9 }
 0x260   : > { %1684 = vrot.lane.b32.xlu1 %v5104_v7, %s4807_s9 }
 0x263   : > { %1698 = vrot.lane.b32.xlu0 %v5096_v5, %s4807_s9 }
 0x264   : > { %1686 = vrot.lane.b32.xlu1 %v5118_v12, %s4807_s9 }
 0x267   : > { %1700 = vrot.lane.b32.xlu0 %v5110_v9, %s4807_s9 }
 0x268   : > { %1688 = vrot.lane.b32.xlu1 %v5128_v15, %s4807_s9 }
 0x26b   : > { %1702 = vrot.lane.b32.xlu0 %v5120_v13, %s4807_s9 }
 0x26c   : > { %1690 = vrot.lane.b32.xlu1 %v5044_v52, %s4807_s9 }
 0x26e   : > { %v742_v53 = vpop.trf.xlu1 }
 0x26f   : > { %1704 = vrot.lane.b32.xlu0 %v5138_v19, %s4807_s9  ;;  %4398 = vmatprep.subr.mxu1 %v742_v53 }
 0x270   : > { %1692 = vrot.lane.b32.xlu1 %v5054_v55, %s4807_s9  ;;  %4399 = vmatpush3.msra.mxu1 %v742_v53 }
 0x271   : > { %4401 = vmatmul.mubr.msk.f32.vlgmr.msra.gmra.mxu1 %vm822_vm2, %v5072_v61 }
 0x272   : > { %4403 = vmatprep.mubr.msk.f32.mxu1 %vm822_vm2, %v5082_v0 }
 0x274   : > { %1694 = vrot.lane.b32.xlu1 %v5076_v63, %s4807_s9 }
 0x275   : > { %4404 = vmatmul.mubr.msk.f32.gmra.mxu1 %vm822_vm2, %v5094_v4 }
 0x276   : > { %4406 = vmatprep.mubr.msk.f32.mxu1 %vm822_vm2, %v5104_v7  ;;  %v774_v54 = vpop.trf.xlu0 }
 0x277   : > { %4412 = vmatprep.subr.mxu1 %v774_v54 }
 0x278   : > { %1710 = vrot.lane.b32.xlu1 %v5070_v60, %s4807_s9  ;;  %4413 = vmatpush3.msra.mxu1 %v774_v54 }
 0x279   : > { %4407 = vmatmul.mubr.msk.f32.gmra.mxu1 %vm822_vm2, %v5118_v12  ;;  %4440 = vmatprep.subr.mxu1 %v6392_v18 }
 0x27a   : > { %4409 = vmatprep.mubr.msk.f32.mxu1 %vm822_vm2, %v5128_v15 }
 0x27c   : > { %1712 = vrot.lane.b32.xlu1 %v5088_v2, %s4807_s9 }
 0x27d   : > { %4410 = vmatmul.mubr.msk.f32.gmra.mxu1 %vm822_vm2, %v5044_v52 }
 0x27e   : > { %4414 = vmatprep.mubr.msk.f32.mxu1 %vm822_vm2, %v5054_v55  ;;  %v5264_v55 = vpop.f32.mrf.mxu1 }
 0x27f   : > { %6427 = vst [vmem:[#allocation19_spill] sm:$0xff] %v5264_v55 }
 0x280   : > { %1714 = vrot.lane.b32.xlu1 %v5102_v6, %s4807_s9 }
 0x281   : > { %4415 = vmatmul.mubr.msk.f32.vlgmr.msra.gmra.mxu1 %vm822_vm2, %v5076_v63 }
 0x282   : > { %4417 = vmatprep.mubr.msk.f32.mxu1 %vm822_vm2, %v5084_v1 }
 0x284   : > { %1716 = vrot.lane.b32.xlu1 %v5114_v10, %s4807_s9 }
 0x285   : > { %4418 = vmatmul.mubr.msk.f32.gmra.mxu1 %vm822_vm2, %v5096_v5 }
 0x286   : > { %4420 = vmatprep.mubr.msk.f32.mxu1 %vm822_vm2, %v5110_v9 }
 0x288   : > { %1718 = vrot.lane.b32.xlu1 %v5126_v14, %s4807_s9 }
 0x289   : > { %4421 = vmatmul.mubr.msk.f32.gmra.mxu1 %vm822_vm2, %v5120_v13 }
 0x28a   : > { %4423 = vmatprep.mubr.msk.f32.mxu1 %vm822_vm2, %v5138_v19 }
 0x28c   : > { %1720 = vrot.lane.b32.xlu1 %v5134_v17, %s4807_s9 }
 0x28d   : > { %4424 = vmatmul.mubr.msk.f32.gmra.mxu1 %vm822_vm2, %v5066_v59 }
 0x28e   : > { %v806_v52 = vpop.trf.xlu1 }
 0x28f   : > { %4426 = vmatprep.subr.mxu0 %v806_v52 }
 0x290   : > { %4427 = vmatpush3.msra.mxu0 %v806_v52 }
 0x291   : > { %4429 = vmatmul.mubr.msk.f32.vlgmr.msra.gmra.mxu0 %vm822_vm2, %v5070_v60  ;;  %4459 = vmatprep.subr.mxu0 %v6392_v18 }
 0x292   : > { %4431 = vmatprep.mubr.msk.f32.mxu0 %vm822_vm2, %v5088_v2 }
 0x295   : > { %4432 = vmatmul.mubr.msk.f32.gmra.mxu0 %vm822_vm2, %v5102_v6 }
 0x296   : > { %4434 = vmatprep.mubr.msk.f32.mxu0 %vm822_vm2, %v5114_v10 }
 0x299   : > { %4435 = vmatmul.mubr.msk.f32.gmra.mxu0 %vm822_vm2, %v5126_v14 }
 0x29a   : > { %4437 = vmatprep.mubr.msk.f32.mxu0 %vm822_vm2, %v5134_v17 }
 0x29d   : > { %4438 = vmatmul.mubr.msk.f32.gmra.mxu0 %vm822_vm2, %v5062_v56 }
 0x2b1   : > { %v5330_v50 = vpop.permute.xlu0 %1676 }
 0x2b5   : > { %v5336_v62 = vpop.permute.xlu0 %1664 }
 0x2b6   : > { %6430 = vst [vmem:[#allocation22_spill] sm:$0xff] %v5336_v62 }
 0x2b9   : > { %v5346_v16 = vpop.permute.xlu0 %1666 }
 0x2ba   : > { %6431 = vst [vmem:[#allocation23_spill] sm:$0xff] %v5346_v16 }
 0x2bd   : > { %v5356_v54 = vpop.permute.xlu0 %1668 }
 0x2be   : > { %v5298_v17 = vpop.permute.xlu1 %1660  ;;  %6433 = vst [vmem:[#allocation25_spill] sm:$0xff] %v5356_v54 }
 0x2c2   : > { %v5300_v19 = vpop.permute.xlu1 %1662 }
 0x2c3   : > { %6428 = vst [vmem:[#allocation20_spill] sm:$0xff] %v5300_v19 }
 0x2c6   : > { %v5302_v21 = vpop.permute.xlu1 %1678 }
 0x2ca   : > { %v5310_v27 = vpop.permute.xlu1 %1680 }
 0x2ce   : > { %v5318_v31 = vpop.permute.xlu1 %1682 }
 0x2d2   : > { %v5326_v44 = vpop.permute.xlu1 %1684 }
 0x2d6   : > { %v5328_v47 = vpop.permute.xlu1 %1686 }
 0x2da   : > { %v5332_v57 = vpop.permute.xlu1 %1688 }
 0x2de   : > { %v5344_v11 = vpop.permute.xlu1 %1690 }
 0x2e2   : > { %v5352_v53 = vpop.permute.xlu1 %1692 }
 0x2e3   : > { %6432 = vst [vmem:[#allocation24_spill] sm:$0xff] %v5352_v53 }
 0x2fc   : > { %v5266_v60 = vpop.f32.mrf.mxu1 }
 0x2fd   : > { %v1311_v61 = vsel %vm1307_vm3, %v5266_v60, -inf }
 0x2fe   : > { %1312 = vmax.xlane.f32.xlu1 %v1311_v61  ;;  %v5270_v63 = vpop.f32.mrf.mxu1  ;;  %v5360_v61 = vpop.permute.xlu1 %1694 }
 0x2ff   : > { %v1308_v1 = vsel %vm1307_vm3, %v5270_v63, -inf  ;;  %6434 = vst [vmem:[#allocation26_spill] sm:$0xff] %v5360_v61 }
 0x300   : > { %v5272_v0 = vpop.f32.mrf.mxu1 }
 0x301   : > { %v1317_v5 = vsel %vm1307_vm3, %v5272_v0, -inf }
 0x302   : > { %1309 = vmax.xlane.f32.xlu1 %v1308_v1  ;;  %v5276_v2 = vpop.f32.mrf.mxu1 }
 0x303   : > { %v1314_v9 = vsel %vm1307_vm3, %v5276_v2, -inf }
 0x304   : > { %v5278_v4 = vpop.f32.mrf.mxu1 }
 0x305   : > { %v1323_v13 = vsel %vm1307_vm3, %v5278_v4, -inf }
 0x306   : > { %1318 = vmax.xlane.f32.xlu1 %v1317_v5  ;;  %v5282_v6 = vpop.f32.mrf.mxu1  ;;  %v5364_v5 = vpop.permute.xlu0 %1670 }
 0x307   : > { %v1320_v15 = vsel %vm1307_vm3, %v5282_v6, -inf  ;;  %6435 = vst [vmem:[#allocation27_spill] sm:$0xff] %v5364_v5 }
 0x308   : > { %v5284_v7 = vpop.f32.mrf.mxu1 }
 0x309   : > { %v1329_v10 = vsel %vm1307_vm3, %v5284_v7, -inf }
 0x30a   : > { %1315 = vmax.xlane.f32.xlu1 %v1314_v9  ;;  %1330 = vmax.xlane.f32.xlu0 %v1329_v10  ;;  %v5290_v12 = vpop.f32.mrf.mxu1  ;;  %v5368_v10 = vpop.permute.xlu1 %1710 }
 0x30b   : > { %v1326_v14 = vsel %vm1307_vm3, %v5290_v12, -inf }
 0x30e   : > { %1324 = vmax.xlane.f32.xlu1 %v1323_v13  ;;  %1327 = vmax.xlane.f32.xlu0 %v1326_v14  ;;  %v5372_v14 = vpop.permute.xlu0 %1672 }
 0x30f   : > { %6436 = vst [vmem:[#allocation28_spill] sm:$0xff] %v5372_v14 }
 0x312   : > { %1321 = vmax.xlane.f32.xlu1 %v1320_v15 }
 0x331   : > { %v5304_v23 = vpop.f32.mrf.mxu1 }
 0x332   : > { %v1335_v24 = vsel %vm1307_vm3, %v5304_v23, -inf }
 0x333   : > { %1336 = vmax.xlane.f32.xlu0 %v1335_v24  ;;  %v5308_v25 = vpop.f32.mrf.mxu1 }
 0x334   : > { %v1332_v20 = vsel %vm1307_vm3, %v5308_v25, -inf }
 0x335   : > { %v5312_v28 = vpop.f32.mrf.mxu1 }
 0x336   : > { %v1341_v52 = vsel %vm1307_vm3, %v5312_v28, -inf }
 0x337   : > { %v5314_v29 = vpop.f32.mrf.mxu1 }
 0x338   : > { %v1338_v13 = vsel %vm1307_vm3, %v5314_v29, -inf }
 0x339   : > { %v5316_v30 = vpop.f32.mrf.mxu1 }
 0x33b   : > { %v5320_v35 = vpop.f32.mrf.mxu1 }
 0x33c   : > { %v1344_v55 = vsel %vm1307_vm3, %v5320_v35, -inf }
 0x33d   : > { %v5322_v38 = vpop.f32.mrf.mxu1 }
 0x33e   : > { %v1353_v41 = vsel %vm1307_vm3, %v5322_v38, -inf }
 0x33f   : > { %1354 = vmax.xlane.f32.xlu1 %v1353_v41  ;;  %v5378_v41 = vpop.permute.xlu1 %1712 }
 0x343   : > { %v5390_v18 = vpop.permute.xlu1 %1714 }
 0x350   : > { %1722 = vrot.lane.b32.xlu1 %v5062_v56, %s4807_s9 }
 0x351   : > { %v5340_v3 = vpop.f32.mrf.mxu0 }
 0x352   : > { %v1383_v8 = vsel %vm1307_vm3, %v5340_v3, -inf }
 0x353   : > { %1384 = vmax.xlane.f32.xlu0 %v1383_v8  ;;  %v5350_v22 = vpop.f32.mrf.mxu0  ;;  %v5380_v8 = vpop.f32.mrf.mxu1 }
 0x354   : > { %v1380_v56 = vsel %vm1307_vm3, %v5350_v22, -inf }
 0x355   : > { %v5362_v1 = vpop.f32.mrf.mxu0 }
 0x356   : > { %v1389_v9 = vsel %vm1307_vm3, %v5362_v1, -inf }
 0x357   : > { %1333 = vmax.xlane.f32.xlu0 %v1332_v20  ;;  %v5374_v15 = vpop.f32.mrf.mxu0  ;;  %v5382_v20 = vpop.permute.xlu0 %1674 }
 0x358   : > { %v1386_v24 = vsel %vm1307_vm3, %v5374_v15, -inf  ;;  %6437 = vst [vmem:[#allocation29_spill] sm:$0xff] %v5382_v20 }
 0x35b   : > { %1381 = vmax.xlane.f32.xlu0 %v1380_v56  ;;  %v1347_v56 = vsel %vm1307_vm3, %v5316_v30, -inf  ;;  %v5394_v33 = vpop.permute.xlu0 %1708 }
 0x35f   : > { %1342 = vmax.xlane.f32.xlu0 %v1341_v52  ;;  %v5386_v52 = vpop.f32.mrf.mxu0 }
 0x361   : > { %v5404_v58 = vpop.f32.mrf.mxu0 }
 0x362   : > { %v1392_v46 = vsel %vm1307_vm3, %v5404_v58, -inf }
 0x363   : > { %1390 = vmax.xlane.f32.xlu0 %v1389_v9  ;;  %v5388_v9 = vpop.f32.mrf.mxu1 }
 0x365   : > { %v5398_v51 = vpop.f32.mrf.mxu1 }
 0x366   : > { %v1356_v45 = vsel %vm1307_vm3, %v5398_v51, -inf }
 0x367   : > { %1339 = vmax.xlane.f32.xlu0 %v1338_v13  ;;  %v1395_v13 = vsel %vm1307_vm3, %v5386_v52, -inf  ;;  %v5408_v49 = vpop.f32.mrf.mxu1 }
 0x368   : > { %v1365_v48 = vsel %vm1307_vm3, %v5408_v49, -inf }
 0x369   : > { %v5418_v39 = vpop.f32.mrf.mxu1 }
 0x36a   : > { %v1362_v40 = vsel %vm1307_vm3, %v5418_v39, -inf }
 0x36b   : > { %1387 = vmax.xlane.f32.xlu0 %v1386_v24  ;;  %v1359_v24 = vsel %vm1307_vm3, %v5388_v9, -inf  ;;  %v5428_v42 = vpop.f32.mrf.mxu1 }
 0x36d   : > { %v5436_v36 = vpop.f32.mrf.mxu1 }
 0x36e   : > { %v1368_v37 = vsel %vm1307_vm3, %v5436_v36, -inf }
 0x36f   : > { %1348 = vmax.xlane.f32.xlu0 %v1347_v56  ;;  %v5402_v56 = vpop.permute.xlu1 %1716  ;;  %v5442_v26 = vpop.f32.mrf.mxu1 }
 0x373   : > { %1396 = vmax.xlane.f32.xlu0 %v1395_v13  ;;  %v5410_v13 = vpop.permute.xlu0 %1696 }
 0x374   : > { %1360 = vmax.xlane.f32.xlu1 %v1359_v24  ;;  %6438 = vst [vmem:[#allocation30_spill] sm:$0xff] %v5410_v13  ;;  %v5414_v24 = vpop.f32.mrf.mxu0  ;;  %v5448_v13 = vpop.f32.mrf.mxu1 }
 0x375   : > { %v1401_v43 = vsel %vm1307_vm3, %v5414_v24, -inf }
 0x377   : > { %1345 = vmax.xlane.f32.xlu0 %v1344_v55  ;;  %v5420_v55 = vpop.permute.xlu1 %1718 }
 0x378   : > { %1357 = vmax.xlane.f32.xlu1 %v1356_v45  ;;  %v5424_v45 = vpop.permute.xlu0 %1698 }
 0x379   : > { %6439 = vst [vmem:[#allocation31_spill] sm:$0xff] %v5424_v45 }
 0x37b   : > { %1393 = vmax.xlane.f32.xlu0 %v1392_v46  ;;  %v1350_v46 = vsel %vm1307_vm3, %v5380_v8, -inf  ;;  %v5432_v32 = vpop.permute.xlu1 %1720 }
 0x37c   : > { %1366 = vmax.xlane.f32.xlu1 %v1365_v48  ;;  %v1371_v48 = vsel %vm1307_vm3, %v5428_v42, -inf  ;;  %v5438_v34 = vpop.permute.xlu0 %1700 }
 0x37d   : > { %6440 = vst [vmem:[#allocation32_spill] sm:$0xff] %v5438_v34 }
 0x37f   : > { %1402 = vmax.xlane.f32.xlu0 %v1401_v43 }
 0x380   : > { %1363 = vmax.xlane.f32.xlu1 %v1362_v40  ;;  %v5444_v40 = vpop.permute.xlu0 %1702 }
 0x381   : > { %6441 = vst [vmem:[#allocation33_spill] sm:$0xff] %v5444_v40 }
 0x383   : > { %1351 = vmax.xlane.f32.xlu0 %v1350_v46  ;;  %v1377_v46 = vsel %vm1307_vm3, %v5442_v26, -inf }
 0x384   : > { %1372 = vmax.xlane.f32.xlu1 %v1371_v48  ;;  %v1374_v48 = vsel %vm1307_vm3, %v5448_v13, -inf  ;;  %v5452_v34 = vpop.permute.xlu0 %1704 }
 0x385   : > { %6442 = vst [vmem:[#allocation34_spill] sm:$0xff] %v5452_v34 }
 0x387   : > { %v1313_v43 = vpop.xlane.xlu1 %1312 }
 0x388   : > { %1369 = vmax.xlane.f32.xlu1 %v1368_v37 }
 0x38b   : > { %v1310_v45 = vpop.xlane.xlu1 %1309 }
 0x38c   : > { %1378 = vmax.xlane.f32.xlu1 %v1377_v46 }
 0x38f   : > { %v1319_v61 = vpop.xlane.xlu1 %1318 }
 0x390   : > { %1375 = vmax.xlane.f32.xlu1 %v1374_v48 }
 0x393   : > { %v1316_v53 = vpop.xlane.xlu1 %1315  ;;  %v1331_v20 = vpop.xlane.xlu0 %1330 }
 0x394   : > { %v1411_v40 = vsub.f32 %v5284_v7, %v1331_v20  ;;  %v1407_v20 = vsub.f32 %v5272_v0, %v1319_v61 }
 0x396   : > { %v1450_v62 = vmul.f32 1.442695, %v1411_v40 }
 0x397   : > { %v1325_v14 = vpop.xlane.xlu1 %1324  ;;  %v1328_v54 = vpop.xlane.xlu0 %1327 }
 0x398   : > { %v1409_v37 = vsub.f32 %v5278_v4, %v1325_v14  ;;  %v1410_v48 = vsub.f32 %v5290_v12, %v1328_v54  ;;  %v1405_v4 = vsub.f32 %v5266_v60, %v1313_v43  ;;  %v5478_v54 = vpop.f32.mrf.mxu0 }
 0x399   : > { %1706 = vrot.lane.b32.xlu0 %v5066_v59, %s4807_s9  ;;  %v1404_v59 = vsub.f32 %v5270_v63, %v1310_v45  ;;  %v1406_v63 = vsub.f32 %v5276_v2, %v1316_v53  ;;  %v1398_v45 = vsel %vm1307_vm3, %v5478_v54, -inf }
 0x39a   : > { %v1446_v5 = vmul.f32 1.442695, %v1409_v37  ;;  %v1448_v19 = vmul.f32 1.442695, %v1410_v48  ;;  %v1438_v14 = vmul.f32 1.442695, %v1405_v4 }
 0x39b   : > { %v1322_v46 = vpop.xlane.xlu1 %1321  ;;  %v1440_v0 = vmul.f32 1.442695, %v1406_v63 }
 0x39c   : > { %4625 = vpow2.f32 %v1446_v5  ;;  %v1408_v16 = vsub.f32 %v5282_v6, %v1322_v46  ;;  %v1436_v6 = vmul.f32 1.442695, %v1404_v59 }
 0x39e   : > { %v1444_v34 = vmul.f32 1.442695, %v1408_v16 }
 0x3a0   : > { %4627 = vpow2.f32 %v1444_v34 }
 0x3a1   : > { %4629 = vpow2.f32 %v1450_v62 }
 0x3a2   : > { %4631 = vpow2.f32 %v1448_v19  ;;  %v1442_v19 = vmul.f32 1.442695, %v1407_v20 }
 0x3a3   : > { %4633 = vpow2.f32 %v1438_v14 }
 0x3a4   : > { %4635 = vpow2.f32 %v1436_v6 }
 0x3a5   : > { %4637 = vpow2.f32 %v1442_v19 }
 0x3a6   : > { %4639 = vpow2.f32 %v1440_v0 }
 0x3a9   : > { %v5462_v7 = vpop.eup %4625 }
 0x3aa   : > { %v1515_v5 = vsel %vm1307_vm3, %v5462_v7, 0.0 }
 0x3ab   : > { %1516 = vadd.xlane.f32.xlu1 %v1515_v5 }
 0x3ad   : > { %v5467_v12 = vpop.eup %4627 }
 0x3ae   : > { %v1512_v34 = vsel %vm1307_vm3, %v5467_v12, 0.0  ;;  %v5471_v60 = vpop.eup %4629 }
 0x3af   : > { %1513 = vadd.xlane.f32.xlu1 %v1512_v34  ;;  %v1521_v62 = vsel %vm1307_vm3, %v5471_v60, 0.0  ;;  %v5476_v16 = vpop.eup %4631 }
 0x3b0   : > { %v1518_v61 = vsel %vm1307_vm3, %v5476_v16, 0.0  ;;  %v5484_v2 = vpop.eup %4633 }
 0x3b1   : > { %v1503_v53 = vsel %vm1307_vm3, %v5484_v2, 0.0  ;;  %v5488_v43 = vpop.eup %4635 }
 0x3b2   : > { %v1500_v48 = vsel %vm1307_vm3, %v5488_v43, 0.0  ;;  %v5493_v4 = vpop.eup %4637 }
 0x3b3   : > { %1522 = vadd.xlane.f32.xlu1 %v1521_v62  ;;  %v1509_v14 = vsel %vm1307_vm3, %v5493_v4, 0.0  ;;  %v5497_v59 = vpop.eup %4639 }
 0x3b4   : > { %v1506_v5 = vsel %vm1307_vm3, %v5497_v59, 0.0 }
 0x3b7   : > { %1519 = vadd.xlane.f32.xlu1 %v1518_v61 }
 0x3b8   : > { %1399 = vmax.xlane.f32.xlu0 %v1398_v45 }
 0x3bc   : > { %v1337_v40 = vpop.xlane.xlu0 %1336  ;;  %1504 = vadd.xlane.f32.xlu0 %v1503_v53 }
 0x3bd   : > { %v1413_v37 = vsub.f32 %v5304_v23, %v1337_v40 }
 0x3bf   : > { %v1454_v46 = vmul.f32 1.442695, %v1413_v37 }
 0x3c0   : > { %1501 = vadd.xlane.f32.xlu0 %v1500_v48 }
 0x3c1   : > { %4641 = vpow2.f32 %v1454_v46 }
 0x3c4   : > { %1510 = vadd.xlane.f32.xlu0 %v1509_v14 }
 0x3c8   : > { %1507 = vadd.xlane.f32.xlu0 %v1506_v5 }
 0x3ce   : > { %v5501_v6 = vpop.eup %4641 }
 0x3cf   : > { %v1527_v23 = vsel %vm1307_vm3, %v5501_v6, 0.0 }
 0x3d0   : > { %1528 = vadd.xlane.f32.xlu1 %v1527_v23 }
 0x3dc   : > { %v1385_v20 = vpop.xlane.xlu0 %1384 }
 0x3dd   : > { %v1429_v34 = vsub.f32 %v5340_v3, %v1385_v20 }
 0x3df   : > { %v1486_v19 = vmul.f32 1.442695, %v1429_v34  ;;  %v1355_v34 = vpop.xlane.xlu1 %1354 }
 0x3e0   : > { %v1334_v63 = vpop.xlane.xlu0 %1333 }
 0x3e1   : > { %4643 = vpow2.f32 %v1486_v19  ;;  %v1412_v62 = vsub.f32 %v5308_v25, %v1334_v63 }
 0x3e3   : > { %v1452_v0 = vmul.f32 1.442695, %v1412_v62 }
 0x3e4   : > { %v1382_v61 = vpop.xlane.xlu0 %1381 }
 0x3e5   : > { %4645 = vpow2.f32 %v1452_v0  ;;  %v1428_v45 = vsub.f32 %v5350_v22, %v1382_v61 }
 0x3e7   : > { %v1484_v53 = vmul.f32 1.442695, %v1428_v45 }
 0x3e8   : > { %v1343_v40 = vpop.xlane.xlu0 %1342 }
 0x3e9   : > { %4647 = vpow2.f32 %v1484_v53  ;;  %v1415_v37 = vsub.f32 %v5312_v28, %v1343_v40 }
 0x3eb   : > { %v1458_v46 = vmul.f32 1.442695, %v1415_v37 }
 0x3ec   : > { %v1391_v48 = vpop.xlane.xlu0 %1390 }
 0x3ed   : > { %4649 = vpow2.f32 %v1458_v46  ;;  %v1431_v3 = vsub.f32 %v5362_v1, %v1391_v48 }
 0x3ee   : > { %v5510_v14 = vpop.eup %4643 }
 0x3ef   : > { %v1490_v5 = vmul.f32 1.442695, %v1431_v3  ;;  %v1575_v25 = vsel %vm1307_vm3, %v5510_v14, 0.0 }
 0x3f0   : > { %v1340_v23 = vpop.xlane.xlu0 %1339  ;;  %1576 = vadd.xlane.f32.xlu1 %v1575_v25 }
 0x3f1   : > { %4651 = vpow2.f32 %v1490_v5  ;;  %v1414_v22 = vsub.f32 %v5314_v29, %v1340_v23  ;;  %v5524_v29 = vpop.permute.xlu1 %1722 }
 0x3f2   : > { %v5515_v20 = vpop.eup %4645 }
 0x3f3   : > { %v1456_v28 = vmul.f32 1.442695, %v1414_v22  ;;  %v1524_v19 = vsel %vm1307_vm3, %v5515_v20, 0.0 }
 0x3f4   : > { %v1388_v63 = vpop.xlane.xlu0 %1387  ;;  %1525 = vadd.xlane.f32.xlu1 %v1524_v19 }
 0x3f5   : > { %4653 = vpow2.f32 %v1456_v28  ;;  %v1430_v1 = vsub.f32 %v5374_v15, %v1388_v63  ;;  %v1419_v63 = vsub.f32 %v5322_v38, %v1355_v34 }
 0x3f6   : > { %v5520_v62 = vpop.eup %4647 }
 0x3f7   : > { %v1488_v0 = vmul.f32 1.442695, %v1430_v1  ;;  %v1572_v61 = vsel %vm1307_vm3, %v5520_v62, 0.0 }
 0x3f8   : > { %v1349_v45 = vpop.xlane.xlu0 %1348  ;;  %1573 = vadd.xlane.f32.xlu1 %v1572_v61 }
 0x3f9   : > { %4655 = vpow2.f32 %v1488_v0  ;;  %v1417_v53 = vsub.f32 %v5316_v30, %v1349_v45 }
 0x3fa   : > { %v5527_v40 = vpop.eup %4649 }
 0x3fb   : > { %v1462_v37 = vmul.f32 1.442695, %v1417_v53  ;;  %v1533_v46 = vsel %vm1307_vm3, %v5527_v40, 0.0 }
 0x3fc   : > { %v1397_v15 = vpop.xlane.xlu0 %1396  ;;  %1534 = vadd.xlane.f32.xlu1 %v1533_v46 }
 0x3fd   : > { %4657 = vpow2.f32 %v1462_v37  ;;  %v1433_v48 = vsub.f32 %v5386_v52, %v1397_v15  ;;  %v5532_v3 = vpop.xlane.xlu1 %1360 }
 0x3fe   : > { %v5534_v5 = vpop.eup %4651 }
 0x3ff   : > { %v1494_v25 = vmul.f32 1.442695, %v1433_v48  ;;  %v1581_v23 = vsel %vm1307_vm3, %v5534_v5, 0.0 }
 0x400   : > { %v1346_v30 = vpop.xlane.xlu0 %1345  ;;  %1582 = vadd.xlane.f32.xlu1 %v1581_v23 }
 0x401   : > { %4659 = vpow2.f32 %v1494_v25  ;;  %v1416_v22 = vsub.f32 %v5320_v35, %v1346_v30  ;;  %v5539_v28 = vpop.xlane.xlu1 %1357  ;;  %v1466_v35 = vmul.f32 1.442695, %v1419_v63 }
 0x402   : > { %v5541_v19 = vpop.eup %4653 }
 0x403   : > { %v1460_v52 = vmul.f32 1.442695, %v1416_v22  ;;  %v1530_v1 = vsel %vm1307_vm3, %v5541_v19, 0.0 }
 0x404   : > { %v1394_v0 = vpop.xlane.xlu0 %1393  ;;  %1531 = vadd.xlane.f32.xlu1 %v1530_v1 }
 0x405   : > { %4661 = vpow2.f32 %v1460_v52  ;;  %v1432_v61 = vsub.f32 %v5404_v58, %v1394_v0  ;;  %v5547_v45 = vpop.xlane.xlu1 %1366 }
 0x406   : > { %v5549_v53 = vpop.eup %4655 }
 0x407   : > { %v1492_v37 = vmul.f32 1.442695, %v1432_v61  ;;  %v1578_v46 = vsel %vm1307_vm3, %v5549_v53, 0.0 }
 0x408   : > { %v1403_v15 = vpop.xlane.xlu0 %1402  ;;  %1579 = vadd.xlane.f32.xlu1 %v1578_v46 }
 0x409   : > { %4663 = vpow2.f32 %v1492_v37  ;;  %v1435_v38 = vsub.f32 %v5414_v24, %v1403_v15  ;;  %v5554_v34 = vpop.xlane.xlu1 %1363 }
 0x40a   : > { %v5556_v48 = vpop.eup %4657  ;;  %4665 = vpow2.f32 %v1466_v35 }
 0x40b   : > { %v1498_v58 = vmul.f32 1.442695, %v1435_v38  ;;  %v1539_v25 = vsel %vm1307_vm3, %v5556_v48, 0.0 }
 0x40c   : > { %1540 = vadd.xlane.f32.xlu0 %v1539_v25  ;;  %v1352_v23 = vpop.xlane.xlu0 %1351 }
 0x40d   : > { %v1418_v30 = vsub.f32 %v5380_v8, %v1352_v23  ;;  %v1373_v22 = vpop.xlane.xlu1 %1372  ;;  %4667 = vpow2.f32 %v1498_v58 }
 0x40e   : > { %v5561_v63 = vpop.eup %4659  ;;  %v1425_v52 = vsub.f32 %v5428_v42, %v1373_v22 }
 0x40f   : > { %v1464_v24 = vmul.f32 1.442695, %v1418_v30  ;;  %v1587_v1 = vsel %vm1307_vm3, %v5561_v63, 0.0 }
 0x410   : > { %v1478_v0 = vmul.f32 1.442695, %v1425_v52  ;;  %1588 = vadd.xlane.f32.xlu0 %v1587_v1 }
 0x411   : > { %v1370_v61 = vpop.xlane.xlu1 %1369 }
 0x412   : > { %v5566_v35 = vpop.eup %4661  ;;  %4669 = vpow2.f32 %v1478_v0  ;;  %v1424_v37 = vsub.f32 %v5436_v36, %v1370_v61 }
 0x413   : > { %4671 = vpow2.f32 %v1464_v24  ;;  %v1536_v8 = vsel %vm1307_vm3, %v5566_v35, 0.0 }
 0x414   : > { %v1476_v46 = vmul.f32 1.442695, %v1424_v37  ;;  %1537 = vadd.xlane.f32.xlu0 %v1536_v8 }
 0x415   : > { %v5571_v42 = vpop.xlane.xlu1 %1378 }
 0x416   : > { %v5573_v15 = vpop.eup %4663  ;;  %4673 = vpow2.f32 %v1476_v46 }
 0x417   : > { %v1584_v38 = vsel %vm1307_vm3, %v5573_v15, 0.0  ;;  %v5577_v58 = vpop.eup %4665 }
 0x418   : > { %1585 = vadd.xlane.f32.xlu0 %v1584_v38  ;;  %v1545_v23 = vsel %vm1307_vm3, %v5577_v58, 0.0 }
 0x419   : > { %v1376_v25 = vpop.xlane.xlu1 %1375 }
 0x41a   : > { %v1426_v36 = vsub.f32 %v5448_v13, %v1376_v25  ;;  %v5582_v30 = vpop.eup %4667 }
 0x41b   : > { %v1593_v24 = vsel %vm1307_vm3, %v5582_v30, 0.0 }
 0x41c   : > { %v1480_v22 = vmul.f32 1.442695, %v1426_v36  ;;  %1546 = vadd.xlane.f32.xlu0 %v1545_v23  ;;  %v5602_v23 = vpop.permute.xlu0 %1706 }
 0x41e   : > { %4675 = vpow2.f32 %v1480_v22  ;;  %v1421_v22 = vsub.f32 %v5388_v9, %v5532_v3 }
 0x41f   : > { %v5584_v52 = vpop.eup %4669 }
 0x420   : > { %6443 = vst [vmem:[#allocation35_spill] sm:$0xff] %v5584_v52  ;;  %v5588_v1 = vpop.eup %4671  ;;  %1594 = vadd.xlane.f32.xlu0 %v1593_v24  ;;  %v1563_v0 = vsel %vm1307_vm3, %v5584_v52, 0.0 }
 0x421   : > { %1564 = vadd.xlane.f32.xlu1 %v1563_v0  ;;  %v1542_v61 = vsel %vm1307_vm3, %v5588_v1, 0.0 }
 0x423   : > { %v5592_v13 = vpop.eup %4673 }
 0x424   : > { %6444 = vst [vmem:[#allocation36_spill] sm:$0xff] %v5592_v13  ;;  %1543 = vadd.xlane.f32.xlu0 %v1542_v61  ;;  %v1560_v37 = vsel %vm1307_vm3, %v5592_v13, 0.0  ;;  %v1420_v13 = vsub.f32 %v5398_v51, %v5539_v28  ;;  %v6446_v28 = vmov 0.0  }
 0x425   : > { %1561 = vadd.xlane.f32.xlu1 %v1560_v37  ;;  %v1470_v37 = vmul.f32 1.442695, %v1421_v22  ;;  %4475 = vmatprep.mubr.msk.f32.mxu0 %vm4808_vm4, %v6446_v28 }
 0x426   : > { %4456 = vmatprep.mubr.msk.f32.mxu1 %vm4808_vm4, %v6446_v28 }
 0x42b   : > { %v5598_v8 = vpop.eup %4675 }
 0x42c   : > { %6445 = vst [vmem:[#allocation37_spill] sm:$0xff] %v5598_v8  ;;  %v1566_v46 = vsel %vm1307_vm3, %v5598_v8, 0.0  ;;  %v1468_v8 = vmul.f32 1.442695, %v1420_v13 }
 0x42d   : > { %1567 = vadd.xlane.f32.xlu1 %v1566_v46 }
 0x434   : > { %v1517_v38 = vpop.xlane.xlu1 %1516 }
 0x438   : > { %v1514_v25 = vpop.xlane.xlu1 %1513 }
 0x43c   : > { %v1523_v36 = vpop.xlane.xlu1 %1522 }
 0x43d   : > { %4677 = vrcp.f32 %v1523_v36  ;;  %v1423_v36 = vsub.f32 %v5408_v49, %v5547_v45  ;;  %v1427_v49 = vsub.f32 %v5442_v26, %v5571_v42 }
 0x440   : > { %v1520_v24 = vpop.xlane.xlu1 %1519 }
 0x441   : > { %4679 = vrcp.f32 %v1520_v24  ;;  %v1400_v0 = vpop.xlane.xlu0 %1399  ;;  %v1422_v24 = vsub.f32 %v5418_v39, %v5554_v34  ;;  %v1482_v34 = vmul.f32 1.442695, %v1427_v49 }
 0x442   : > { %v1434_v61 = vsub.f32 %v5478_v54, %v1400_v0  ;;  %4681 = vrcp.f32 %v1517_v38  ;;  %v1474_v38 = vmul.f32 1.442695, %v1423_v36 }
 0x443   : > { %v1472_v13 = vmul.f32 1.442695, %v1422_v24 }
 0x444   : > { %v1496_v46 = vmul.f32 1.442695, %v1434_v61 }
 0x445   : > { %v1505_v52 = vpop.xlane.xlu0 %1504 }
 0x446   : > { %4683 = vpow2.f32 %v1496_v46 }
 0x447   : > { %4685 = vrcp.f32 %v1514_v25 }
 0x448   : > { %4687 = vpow2.f32 %v1470_v37 }
 0x449   : > { %v1502_v9 = vpop.xlane.xlu0 %1501  ;;  %4689 = vpow2.f32 %v1468_v8 }
 0x44a   : > { %v4678_v3 = vpop.eup %4677 }
 0x44b   : > { %v1611_v54 = vmul.f32 %v4678_v3, %v5471_v60 }
 0x44d   : > { %v1511_v22 = vpop.xlane.xlu0 %1510  ;;  %4441 = vmatpush3.xpose.msk.msra.mxu1 %vm1307_vm3, %v1611_v54 }
 0x44e   : > { %v4680_v51 = vpop.eup %4679  ;;  %4691 = vrcp.f32 %v1511_v22  ;;  %4442 = vmatprep.subr.mxu1 %v6446_v28 }
 0x44f   : > { %v1609_v45 = vmul.f32 %v4680_v51, %v5476_v16  ;;  %v4682_v25 = vpop.eup %4681  ;;  %4693 = vpow2.f32 %v1474_v38 }
 0x450   : > { %v1607_v8 = vmul.f32 %v4682_v25, %v5462_v7 }
 0x451   : > { %v1508_v39 = vpop.xlane.xlu0 %1507  ;;  %4443 = vmatpush3.xpose.msk.msra.mxu1 %vm1307_vm3, %v1609_v45 }
 0x452   : > { %4695 = vrcp.f32 %v1508_v39  ;;  %4444 = vmatprep.subr.mxu1 %v6446_v28  ;;  %v6454_v39 = vld [vmem:[#allocation24_spill] sm:$0xff] }
 0x453   : > { %v5621_v60 = vpop.eup %4683  ;;  %4697 = vpow2.f32 %v1472_v13  ;;  %v6453_v13 = vld [vmem:[#allocation29_spill] sm:$0xff] }
 0x454   : > { %v4686_v0 = vpop.eup %4685  ;;  %4699 = vrcp.f32 %v1505_v52  ;;  %v1590_v26 = vsel %vm1307_vm3, %v5621_v60, 0.0 }
 0x455   : > { %v5626_v16 = vpop.eup %4687  ;;  %1591 = vadd.xlane.f32.xlu0 %v1590_v26  ;;  %4445 = vmatpush3.xpose.msk.msra.mxu1 %vm1307_vm3, %v1607_v8  ;;  %4701 = vpow2.f32 %v1482_v34  ;;  %v1605_v42 = vmul.f32 %v4686_v0, %v5467_v12  ;;  %v6455_v8 = vld [vmem:[#allocation26_spill] sm:$0xff] }
 0x456   : > { %4446 = vmatprep.subr.mxu1 %v6446_v28  ;;  %4703 = vrcp.f32 %v1502_v9  ;;  %v1551_v7 = vsel %vm1307_vm3, %v5626_v16, 0.0  ;;  %v5637_v52 = vpop.eup %4689 }
 0x457   : > { %v1548_v12 = vsel %vm1307_vm3, %v5637_v52, 0.0 }
 0x459   : > { %1552 = vadd.xlane.f32.xlu0 %v1551_v7  ;;  %4447 = vmatpush3.xpose.msk.msra.mxu1 %vm1307_vm3, %v1605_v42  ;;  %v6456_v7 = vld [vmem:[#allocation30_spill] sm:$0xff] }
 0x45a   : > { %4448 = vmatprep.subr.mxu1 %v6446_v28 }
 0x45b   : > { %v4692_v61 = vpop.eup %4691 }
 0x45c   : > { %v1603_v37 = vmul.f32 %v4692_v61, %v5493_v4  ;;  %v5644_v46 = vpop.eup %4693 }
 0x45d   : > { %1549 = vadd.xlane.f32.xlu0 %v1548_v12  ;;  %v1557_v3 = vsel %vm1307_vm3, %v5644_v46, 0.0  ;;  %v6457_v12 = vld [vmem:[#allocation31_spill] sm:$0xff] }
 0x45e   : > { %4449 = vmatpush3.xpose.msk.msra.mxu1 %vm1307_vm3, %v1603_v37 }
 0x45f   : > { %v4696_v36 = vpop.eup %4695  ;;  %4450 = vmatprep.subr.mxu1 %v6446_v28 }
 0x460   : > { %v5648_v9 = vpop.eup %4697  ;;  %1788 = vxpose.xlu1.b32.start [1/8] (short) (narrow) %v5330_v50, 8  ;;  %v1601_v24 = vmul.f32 %v4696_v36, %v5497_v59  ;;  %v6458_v36 = vld [vmem:[#allocation32_spill] sm:$0xff] }
 0x461   : > { %v4700_v54 = vpop.eup %4699  ;;  %1558 = vadd.xlane.f32.xlu0 %v1557_v3  ;;  %v1554_v38 = vsel %vm1307_vm3, %v5648_v9, 0.0 }
 0x462   : > { %4451 = vmatpush3.xpose.msk.msra.mxu1 %vm1307_vm3, %v1601_v24  ;;  %v5656_v4 = vpop.eup %4701  ;;  %v1599_v50 = vmul.f32 %v4700_v54, %v5484_v2  ;;  %v6459_v54 = vld [vmem:[#allocation33_spill] sm:$0xff] }
 0x463   : > { %4452 = vmatprep.subr.mxu1 %v6446_v28  ;;  %v4704_v22 = vpop.eup %4703  ;;  %v1569_v59 = vsel %vm1307_vm3, %v5656_v4, 0.0 }
 0x464   : > { %1789 = vxpose.xlu1.b32.cont [2/8] (short) (narrow) %v5302_v21, 8  ;;  %v1597_v51 = vmul.f32 %v4704_v22, %v5488_v43  ;;  %v6460_v22 = vld [vmem:[#allocation34_spill] sm:$0xff] }
 0x465   : > { %1555 = vadd.xlane.f32.xlu0 %v1554_v38 }
 0x466   : > { %4453 = vmatpush3.xpose.msk.msra.mxu1 %vm1307_vm3, %v1599_v50 }
 0x467   : > { %4454 = vmatprep.subr.mxu1 %v6446_v28 }
 0x468   : > { %1790 = vxpose.xlu1.b32.cont [3/8] (short) (narrow) %v5310_v27, 8  ;;  %v1529_v27 = vpop.xlane.xlu1 %1528 }
 0x469   : > { %1570 = vadd.xlane.f32.xlu0 %v1569_v59 }
 0x46a   : > { %4455 = vmatpush3.xpose.msk.msra.mxu1 %vm1307_vm3, %v1597_v51 }
 0x46b   : > { %4478 = vmatprep.subr.mxu1 %v6446_v28 }
 0x46c   : > { %1791 = vxpose.xlu1.b32.cont [4/8] (short) (narrow) %v5318_v31, 8 }
 0x470   : > { %1792 = vxpose.xlu1.b32.cont [5/8] (short) (narrow) %v5326_v44, 8  ;;  %v6447_v44 = vld [vmem:[#allocation20_spill] sm:$0xff] }
 0x474   : > { %1793 = vxpose.xlu1.b32.cont [6/8] (short) (narrow) %v5328_v47, 8 }
 0x478   : > { %1794 = vxpose.xlu1.b32.cont [7/8] (short) (narrow) %v5332_v57, 8 }
 0x47c   : > { %1795 = vxpose.xlu1.b32.end [8/8] (short) (narrow) %v5344_v11, 8 }
 0x480   : > { %1852 = vxpose.xlu1.b32.start [1/8] (short) (narrow) %v5394_v33, 8  ;;  %v5686_v33 = vpop.xlane.xlu1 %1576 }
 0x484   : > { %1853 = vxpose.xlu1.b32.cont [2/8] (short) (narrow) %v5368_v10, 8  ;;  %v1526_v57 = vpop.xlane.xlu1 %1525  ;;  %v6449_v10 = vld [vmem:[#allocation23_spill] sm:$0xff] }
 0x488   : > { %1854 = vxpose.xlu1.b32.cont [3/8] (short) (narrow) %v5378_v41, 8  ;;  %v6450_v41 = vld [vmem:[#allocation25_spill] sm:$0xff] }
 0x48c   : > { %1855 = vxpose.xlu1.b32.cont [4/8] (short) (narrow) %v5390_v18, 8  ;;  %v6448_v18 = vld [vmem:[#allocation22_spill] sm:$0xff] }
 0x490   : > { %1856 = vxpose.xlu1.b32.cont [5/8] (short) (narrow) %v5402_v56, 8 }
 0x494   : > { %1857 = vxpose.xlu1.b32.cont [6/8] (short) (narrow) %v5420_v55, 8  ;;  %v6451_v55 = vld [vmem:[#allocation27_spill] sm:$0xff] }
 0x495   : > { %v1541_v21 = vpop.xlane.xlu0 %1540 }
 0x496   : > { %1756 = vxpose.xlu0.b32.start [1/8] (short) (narrow) %v5298_v17, 8 }
 0x498   : > { %1858 = vxpose.xlu1.b32.cont [7/8] (short) (narrow) %v5432_v32, 8  ;;  %v5694_v32 = vpop.xlane.xlu1 %1573 }
 0x499   : > { %v5683_v31 = vpop.xlane.xlu0 %1588 }
 0x49a   : > { %1757 = vxpose.xlu0.b32.cont [2/8] (short) (narrow) %v6447_v44, 8 }
 0x49c   : > { %1859 = vxpose.xlu1.b32.end [8/8] (short) (narrow) %v5524_v29, 8  ;;  %v1535_v2 = vpop.xlane.xlu1 %1534  ;;  %v6452_v29 = vld [vmem:[#allocation28_spill] sm:$0xff] }
 0x49d   : > { %v1538_v47 = vpop.xlane.xlu0 %1537 }
 0x49e   : > { %1758 = vxpose.xlu0.b32.cont [3/8] (short) (narrow) %v6448_v18, 8 }
 0x4a0   : > { %v1583_v45 = vpop.xlane.xlu1 %1582 }
 0x4a1   : > { %v5690_v11 = vpop.xlane.xlu0 %1585 }
 0x4a2   : > { %1759 = vxpose.xlu0.b32.cont [4/8] (short) (narrow) %v6449_v10, 8 }
 0x4a4   : > { %v1532_v34 = vpop.xlane.xlu1 %1531 }
 0x4a5   : > { %v1547_v17 = vpop.xlane.xlu0 %1546 }
 0x4a6   : > { %4705 = vrcp.f32 %v1547_v17  ;;  %1760 = vxpose.xlu0.b32.cont [5/8] (short) (narrow) %v6450_v41, 8 }
 0x4a8   : > { %v1580_v24 = vpop.xlane.xlu1 %1579 }
 0x4a9   : > { %v1595_v56 = vpop.xlane.xlu0 %1594 }
 0x4aa   : > { %1761 = vxpose.xlu0.b32.cont [6/8] (short) (narrow) %v6451_v55, 8 }
 0x4ac   : > { %v5721_v50 = vpop.xlane.xlu1 %1564 }
 0x4ad   : > { %v1544_v43 = vpop.xlane.xlu0 %1543 }
 0x4ae   : > { %4707 = vrcp.f32 %v1544_v43  ;;  %1762 = vxpose.xlu0.b32.cont [7/8] (short) (narrow) %v6452_v29, 8 }
 0x4af   : > { %4709 = vrcp.f32 %v1541_v21 }
 0x4b0   : > { %4711 = vrcp.f32 %v1538_v47  ;;  %v1562_v51 = vpop.xlane.xlu1 %1561 }
 0x4b1   : > { %4713 = vrcp.f32 %v1535_v2 }
 0x4b2   : > { %1763 = vxpose.xlu0.b32.end [8/8] (short) (narrow) %v6453_v13, 8  ;;  %4715 = vrcp.f32 %v1532_v34  ;;  %v6463_v34 = vld [vmem:[#allocation36_spill] sm:$0xff] }
 0x4b3   : > { %v4706_v49 = vpop.eup %4705  ;;  %4717 = vrcp.f32 %v1529_v27 }
 0x4b4   : > { %v1627_v25 = vmul.f32 %v4706_v49, %v5577_v58  ;;  %4719 = vrcp.f32 %v1526_v57 }
 0x4b5   : > { %4721 = vrcp.f32 %v1595_v56 }
 0x4b6   : > { %4460 = vmatpush3.xpose.msk.msra.mxu0 %vm1307_vm3, %v1627_v25  ;;  %1820 = vxpose.xlu0.b32.start [1/8] (short) (narrow) %v6454_v39, 8  ;;  %v1568_v21 = vpop.xlane.xlu1 %1567 }
 0x4b7   : > { %4461 = vmatprep.subr.mxu0 %v6446_v28 }
 0x4ba   : > { %1821 = vxpose.xlu0.b32.cont [2/8] (short) (narrow) %v6455_v8, 8 }
 0x4bb   : > { %v4708_v0 = vpop.eup %4707 }
 0x4bc   : > { %v1625_v26 = vmul.f32 %v4708_v0, %v5588_v1  ;;  %v4710_v42 = vpop.eup %4709 }
 0x4bd   : > { %v1623_v58 = vmul.f32 %v4710_v42, %v5556_v48  ;;  %v4712_v61 = vpop.eup %4711 }
 0x4be   : > { %4462 = vmatpush3.xpose.msk.msra.mxu0 %vm1307_vm3, %v1625_v26  ;;  %1822 = vxpose.xlu0.b32.cont [3/8] (short) (narrow) %v6456_v7, 8  ;;  %v1621_v1 = vmul.f32 %v4712_v61, %v5566_v35  ;;  %v4714_v37 = vpop.eup %4713 }
 0x4bf   : > { %4463 = vmatprep.subr.mxu0 %v6446_v28  ;;  %v1619_v3 = vmul.f32 %v4714_v37, %v5527_v40  ;;  %v4716_v48 = vpop.eup %4715 }
 0x4c0   : > { %v1617_v35 = vmul.f32 %v4716_v48, %v5541_v19  ;;  %v4718_v38 = vpop.eup %4717 }
 0x4c1   : > { %v1615_v40 = vmul.f32 %v4718_v38, %v5501_v6  ;;  %v4720_v59 = vpop.eup %4719 }
 0x4c2   : > { %4464 = vmatpush3.xpose.msk.msra.mxu0 %vm1307_vm3, %v1623_v58  ;;  %1823 = vxpose.xlu0.b32.cont [4/8] (short) (narrow) %v6457_v12, 8  ;;  %v1613_v19 = vmul.f32 %v4720_v59, %v5515_v20  ;;  %v4722_v27 = vpop.eup %4721 }
 0x4c3   : > { %4465 = vmatprep.subr.mxu0 %v6446_v28  ;;  %v1659_v47 = vmul.f32 %v4722_v27, %v5582_v30 }
 0x4c6   : > { %4466 = vmatpush3.xpose.msk.msra.mxu0 %vm1307_vm3, %v1621_v1  ;;  %1824 = vxpose.xlu0.b32.cont [5/8] (short) (narrow) %v6458_v36, 8 }
 0x4c7   : > { %4467 = vmatprep.subr.mxu0 %v6446_v28 }
 0x4ca   : > { %1825 = vxpose.xlu0.b32.cont [6/8] (short) (narrow) %v6459_v54, 8  ;;  %4468 = vmatpush3.xpose.msk.msra.mxu0 %vm1307_vm3, %v1619_v3 }
 0x4cb   : > { %4469 = vmatprep.subr.mxu0 %v6446_v28 }
 0x4ce   : > { %1826 = vxpose.xlu0.b32.cont [7/8] (short) (narrow) %v6460_v22, 8  ;;  %4470 = vmatpush3.xpose.msk.msra.mxu0 %vm1307_vm3, %v1617_v35 }
 0x4cf   : > { %4471 = vmatprep.subr.mxu0 %v6446_v28 }
 0x4d2   : > { %1827 = vxpose.xlu0.b32.end [8/8] (short) (narrow) %v5602_v23, 8  ;;  %4472 = vmatpush3.xpose.msk.msra.mxu0 %vm1307_vm3, %v1615_v40 }
 0x4d3   : > { %4473 = vmatprep.subr.mxu0 %v6446_v28 }
 0x4d6   : > { %4474 = vmatpush3.xpose.msk.msra.mxu0 %vm1307_vm3, %v1613_v19 }
 0x4d7   : > { %4497 = vmatprep.subr.mxu0 %v6446_v28 }
 0x4dc   : > { %v1804_v44 = vpop.trf.xlu1 }
 0x4dd   : > { %4476 = vmatmul.mubr.msk.f32.vlgmr.msra.gmra.mxu0 %vm1307_vm3, %v1804_v44 }
 0x4de   : > { %4498 = vmatpush3.xpose.msk.msra.mxu0 %vm1307_vm3, %v1659_v47  ;;  %v1592_v6 = vpop.xlane.xlu0 %1591  ;;  %4513 = vmatprep.mubr.msk.f32.mxu0 %vm4808_vm4, %v6446_v28 }
 0x4df   : > { %4723 = vrcp.f32 %v1592_v6  ;;  %4499 = vmatprep.subr.mxu0 %v6446_v28  ;;  %v4809_v6 = vmov 1983009808  }
 0x4e0   : > { %4725 = vrcp.f32 %v5683_v31 }
 0x4e1   : > { %4727 = vrcp.f32 %v5690_v11 }
 0x4e2   : > { %v1553_v20 = vpop.xlane.xlu0 %1552  ;;  %4729 = vrcp.f32 %v1583_v45 }
 0x4e3   : > { %4731 = vrcp.f32 %v1580_v24 }
 0x4e4   : > { %4733 = vrcp.f32 %v5686_v33 }
 0x4e5   : > { %4735 = vrcp.f32 %v5694_v32 }
 0x4e6   : > { %v1550_v30 = vpop.xlane.xlu0 %1549 }
 0x4ea   : > { %v1559_v31 = vpop.xlane.xlu0 %1558 }
 0x4ec   : > { %v4724_v23 = vpop.eup %4723 }
 0x4ed   : > { %v1657_v18 = vmul.f32 %v4724_v23, %v5621_v60  ;;  %v4726_v57 = vpop.eup %4725 }
 0x4ee   : > { %v1655_v10 = vmul.f32 %v4726_v57, %v5561_v63  ;;  %v4728_v17 = vpop.eup %4727  ;;  %v1556_v41 = vpop.xlane.xlu0 %1555  ;;  %v4810_v57 = vmov 1934713408  }
 0x4ef   : > { %4500 = vmatpush3.xpose.msk.msra.mxu0 %vm1307_vm3, %v1657_v18  ;;  %v1653_v11 = vmul.f32 %v4728_v17, %v5573_v15  ;;  %v4730_v60 = vpop.eup %4729 }
 0x4f0   : > { %4501 = vmatprep.subr.mxu0 %v6446_v28  ;;  %v1651_v33 = vmul.f32 %v4730_v60, %v5534_v5  ;;  %v4732_v56 = vpop.eup %4731 }
 0x4f1   : > { %v1649_v63 = vmul.f32 %v4732_v56, %v5549_v53  ;;  %v4734_v55 = vpop.eup %4733 }
 0x4f2   : > { %v1571_v2 = vpop.xlane.xlu0 %1570  ;;  %v1647_v15 = vmul.f32 %v4734_v55, %v5510_v14  ;;  %v4736_v32 = vpop.eup %4735 }
 0x4f3   : > { %4502 = vmatpush3.xpose.msk.msra.mxu0 %vm1307_vm3, %v1655_v10  ;;  %4737 = vrcp.f32 %v1571_v2  ;;  %v1645_v5 = vmul.f32 %v4736_v32, %v5520_v62  ;;  %v6461_v62 = vld [vmem:[#allocation37_spill] sm:$0xff]  ;;  %v2435_v10 = vunpack.c.l.s4 %v4810_v57 }
 0x4f4   : > { %4503 = vmatprep.subr.mxu0 %v6446_v28  ;;  %4739 = vrcp.f32 %v1568_v21 }
 0x4f5   : > { %4741 = vrcp.f32 %v5721_v50  ;;  %v2436_v60 = vunpack.c.0.s8 %v2435_v10 }
 0x4f6   : > { %4743 = vrcp.f32 %v1562_v51 }
 0x4f7   : > { %4504 = vmatpush3.xpose.msk.msra.mxu0 %vm1307_vm3, %v1653_v11  ;;  %4745 = vrcp.f32 %v1559_v31  ;;  %v6464_v31 = vld [vmem:[#allocation4_spill] sm:$0xff] }
 0x4f8   : > { %4505 = vmatprep.subr.mxu0 %v6446_v28  ;;  %4747 = vrcp.f32 %v1556_v41 }
 0x4f9   : > { %4749 = vrcp.f32 %v1553_v20  ;;  %v2403_v20 = vunpack.c.l.s4 %v4809_v6 }
 0x4fa   : > { %4751 = vrcp.f32 %v1550_v30 }
 0x4fb   : > { %4506 = vmatpush3.xpose.msk.msra.mxu0 %vm1307_vm3, %v1651_v33  ;;  %v2404_v18 = vunpack.c.0.s8 %v2403_v20 }
 0x4fc   : > { %4507 = vmatprep.subr.mxu0 %v6446_v28  ;;  %v1868_v53 = vpop.trf.xlu1 }
 0x4fd   : > { %v5801_v11 = vsub.s32 %v2404_v18, %v6464_v31 }
 0x4ff   : > { %4508 = vmatpush3.xpose.msk.msra.mxu0 %vm1307_vm3, %v1649_v63 }
 0x500   : > { %4509 = vmatprep.subr.mxu0 %v6446_v28  ;;  %v4738_v43 = vpop.eup %4737 }
 0x501   : > { %v1643_v29 = vmul.f32 %v4738_v43, %v5656_v4  ;;  %v4740_v13 = vpop.eup %4739  ;;  %v6462_v4 = vld [vmem:[#allocation35_spill] sm:$0xff] }
 0x502   : > { %v1641_v49 = vmul.f32 %v4740_v13, %v6461_v62  ;;  %v4742_v45 = vpop.eup %4741 }
 0x503   : > { %4510 = vmatpush3.xpose.msk.msra.mxu0 %vm1307_vm3, %v1647_v15  ;;  %v1639_v25 = vmul.f32 %v4742_v45, %v6462_v4  ;;  %v4744_v39 = vpop.eup %4743 }
 0x504   : > { %4511 = vmatprep.subr.mxu0 %v6446_v28  ;;  %v1637_v8 = vmul.f32 %v4744_v39, %v6463_v34  ;;  %v4746_v0 = vpop.eup %4745 }
 0x505   : > { %v1635_v26 = vmul.f32 %v4746_v0, %v5644_v46  ;;  %v4748_v42 = vpop.eup %4747 }
 0x506   : > { %v1633_v7 = vmul.f32 %v4748_v42, %v5648_v9  ;;  %v4750_v58 = vpop.eup %4749 }
 0x507   : > { %4512 = vmatpush3.xpose.msk.msra.mxu0 %vm1307_vm3, %v1645_v5  ;;  %v1631_v61 = vmul.f32 %v4750_v58, %v5626_v16  ;;  %v4752_v12 = vpop.eup %4751 }
 0x508   : > { %v1629_v46 = vmul.f32 %v4752_v12, %v5637_v52 }
 0x50a   : > { %4514 = vmatmul.mubr.msk.f32.vlgmr.msra.gmra.mxu0 %vm1307_vm3, %v1868_v53 }
 0x512   : > { %v1772_v14 = vpop.trf.xlu0 }
 0x513   : > { %4457 = vmatmul.mubr.msk.f32.vlgmr.msra.gmra.mxu1 %vm1307_vm3, %v1772_v14 }
 0x514   : > { %4479 = vmatpush3.xpose.msk.msra.mxu1 %vm1307_vm3, %v1643_v29  ;;  %4494 = vmatprep.mubr.msk.f32.mxu1 %vm4808_vm4, %v6446_v28  ;;  %v5804_v29 = vsub.s32 %v2436_v60, %v6464_v31 }
 0x515   : > { %4480 = vmatprep.subr.mxu1 %v6446_v28 }
 0x518   : > { %4481 = vmatpush3.xpose.msk.msra.mxu1 %vm1307_vm3, %v1641_v49 }
 0x519   : > { %4482 = vmatprep.subr.mxu1 %v6446_v28 }
 0x51c   : > { %4483 = vmatpush3.xpose.msk.msra.mxu1 %vm1307_vm3, %v1639_v25 }
 0x51d   : > { %4484 = vmatprep.subr.mxu1 %v6446_v28 }
 0x520   : > { %4485 = vmatpush3.xpose.msk.msra.mxu1 %vm1307_vm3, %v1637_v8 }
 0x521   : > { %4486 = vmatprep.subr.mxu1 %v6446_v28 }
 0x524   : > { %4487 = vmatpush3.xpose.msk.msra.mxu1 %vm1307_vm3, %v1635_v26 }
 0x525   : > { %4488 = vmatprep.subr.mxu1 %v6446_v28 }
 0x528   : > { %4489 = vmatpush3.xpose.msk.msra.mxu1 %vm1307_vm3, %v1633_v7 }
 0x529   : > { %4490 = vmatprep.subr.mxu1 %v6446_v28 }
 0x52c   : > { %4491 = vmatpush3.xpose.msk.msra.mxu1 %vm1307_vm3, %v1631_v61 }
 0x52d   : > { %4492 = vmatprep.subr.mxu1 %v6446_v28 }
 0x530   : > { %4493 = vmatpush3.xpose.msk.msra.mxu1 %vm1307_vm3, %v1629_v46 }
 0x532   : > { %v1836_v1 = vpop.trf.xlu0 }
 0x533   : > { %4495 = vmatmul.mubr.msk.f32.vlgmr.msra.gmra.mxu1 %vm1307_vm3, %v1836_v1 }
 0x59d   : > { %v2074_v9 = vpop.f32.mrf.mxu0 }
 0x59f   : > { %v4477_v37 = vpop.f32.mrf.mxu0 }
 0x5ca   : > { %v2268_v36 = vpop.f32.mrf.mxu0 }
 0x5cc   : > { %v4515_v3 = vpop.f32.mrf.mxu0 }
 0x5d3   : > { %v1977_v48 = vpop.f32.mrf.mxu1 }
 0x5d4   : > { %2272 = vxpose.xlu0.b32.start.end [1/1] (short) (narrow) %v1977_v48, 64 }
 0x5d5   : > { %v4458_v24 = vpop.f32.mrf.mxu1 }
 0x5f1   : > { %2304 = vxpose.xlu0.b32.start.end [1/1] (short) (narrow) %v2074_v9, 64 }
 0x5f3   : > { %v2171_v16 = vpop.f32.mrf.mxu1 }
 0x5f4   : > { %2336 = vxpose.xlu1.b32.start.end [1/1] (short) (narrow) %v2171_v16, 64 }
 0x5f5   : > { %v4496_v54 = vpop.f32.mrf.mxu1 }
 0x611   : > { %2368 = vxpose.xlu1.b32.start.end [1/1] (short) (narrow) %v2268_v36, 64 }
 0x650   : > { %v2288_v28 = vpop.trf.xlu0 }
 0x654   : > { %v2289_v35 = vpop.trf.xlu0 }
 0x658   : > { %v2290_v52 = vpop.trf.xlu0 }
 0x65c   : > { %v2291_v38 = vpop.trf.xlu0 }
 0x660   : > { %v5792_v22 = vpop.trf.xlu0 }
 0x664   : > { %v5794_v59 = vpop.trf.xlu0 }
 0x668   : > { %v5796_v21 = vpop.trf.xlu0 }
 0x66c   : > { %v5798_v44 = vpop.trf.xlu0 }
 0x670   : > { %v2352_v50 = vpop.trf.xlu1  ;;  %v2320_v30 = vpop.trf.xlu0 }
 0x671   : > { %v2400_v41 = vcombine.low %v2288_v28, %v2352_v50  ;;  %v2401_v33 = vcombine.high %v2288_v28, %v2352_v50 }
 0x673   : > { %v2408_v13 = vrot.slane %v2400_v41, %v5801_v11  ;;  %v2415_v62 = vrot.slane %v2401_v33, %v5801_v11 }
 0x674   : > { %v2353_v40 = vpop.trf.xlu1  ;;  %v2321_v56 = vpop.trf.xlu0 }
 0x675   : > { %v2468_v63 = vcombine.low %v2289_v35, %v2353_v40  ;;  %v2469_v55 = vcombine.high %v2289_v35, %v2353_v40 }
 0x677   : > { %v2476_v49 = vrot.slane %v2468_v63, %v5801_v11  ;;  %v2483_v45 = vrot.slane %v2469_v55, %v5801_v11 }
 0x678   : > { %v2354_v51 = vpop.trf.xlu1  ;;  %v2322_v42 = vpop.trf.xlu0 }
 0x679   : > { %v2536_v2 = vcombine.low %v2290_v52, %v2354_v51  ;;  %v2537_v15 = vcombine.high %v2290_v52, %v2354_v51 }
 0x67b   : > { %v5811_v4 = vrot.slane %v2536_v2, %v5801_v11  ;;  %v5815_v39 = vrot.slane %v2537_v15, %v5801_v11 }
 0x67c   : > { %v2355_v19 = vpop.trf.xlu1 }
 0x67d   : > { %v2604_v32 = vcombine.low %v2291_v38, %v2355_v19  ;;  %v2605_v5 = vcombine.high %v2291_v38, %v2355_v19 }
 0x67f   : > { %v5818_v34 = vrot.slane %v2604_v32, %v5801_v11  ;;  %v5821_v8 = vrot.slane %v2605_v5, %v5801_v11 }
 0x680   : > { %v2356_v27 = vpop.trf.xlu1 }
 0x681   : > { %v2672_v7 = vcombine.low %v5792_v22, %v2356_v27  ;;  %v2673_v58 = vcombine.high %v5792_v22, %v2356_v27  ;;  %v2323_v27 = vpop.trf.xlu0 }
 0x683   : > { %v5835_v38 = vrot.slane %v2672_v7, %v5801_v11  ;;  %v5838_v50 = vrot.slane %v2673_v58, %v5801_v11 }
 0x684   : > { %v2357_v47 = vpop.trf.xlu1 }
 0x685   : > { %v2740_v61 = vcombine.low %v5794_v59, %v2357_v47  ;;  %v2741_v12 = vcombine.high %v5794_v59, %v2357_v47 }
 0x687   : > { %v5841_v22 = vrot.slane %v2740_v61, %v5801_v11  ;;  %v5844_v40 = vrot.slane %v2741_v12, %v5801_v11 }
 0x688   : > { %v2358_v23 = vpop.trf.xlu1 }
 0x689   : > { %v2808_v46 = vcombine.low %v5796_v21, %v2358_v23  ;;  %v2809_v1 = vcombine.high %v5796_v21, %v2358_v23 }
 0x68b   : > { %v5850_v47 = vrot.slane %v2809_v1, %v5801_v11 }
 0x68c   : > { %v2359_v17 = vpop.trf.xlu1 }
 0x68d   : > { %v2876_v36 = vcombine.low %v5798_v44, %v2359_v17  ;;  %v2877_v3 = vcombine.high %v5798_v44, %v2359_v17  ;;  %v5847_v44 = vrot.slane %v2808_v46, %v5801_v11 }
 0x68f   : > { %v5853_v6 = vrot.slane %v2876_v36, %v5801_v11  ;;  %v5856_v20 = vrot.slane %v2877_v3, %v5801_v11 }
 0x690   : > { %v2384_v53 = vpop.trf.xlu1 }
 0x691   : > { %v2416_v43 = vcombine.low %v2320_v30, %v2384_v53  ;;  %v2417_v14 = vcombine.high %v2320_v30, %v2384_v53 }
 0x693   : > { %v2424_v25 = vrot.slane %v2416_v43, %v5801_v11  ;;  %v2431_v0 = vrot.slane %v2417_v14, %v5801_v11 }
 0x694   : > { %v2385_v26 = vpop.trf.xlu1 }
 0x695   : > { %v2484_v9 = vcombine.low %v2321_v56, %v2385_v26  ;;  %v2485_v37 = vcombine.high %v2321_v56, %v2385_v26  ;;  %v2432_v48 = vcombine.low %v2408_v13, %v2424_v25  ;;  %v2433_v24 = vcombine.high %v2408_v13, %v2424_v25  ;;  %v2324_v26 = vpop.trf.xlu0 }
 0x696   : > { %v2448_v16 = vcombine.low %v2415_v62, %v2431_v0  ;;  %v2449_v54 = vcombine.high %v2415_v62, %v2431_v0 }
 0x697   : > { %v2492_v28 = vrot.slane %v2484_v9, %v5801_v11  ;;  %v2499_v35 = vrot.slane %v2485_v37, %v5801_v11  ;;  %v2440_v23 = vrot.slane %v2432_v48, %v5804_v29  ;;  %v2447_v30 = vrot.slane %v2433_v24, %v5804_v29 }
 0x698   : > { %v2386_v52 = vpop.trf.xlu1  ;;  %v2456_v18 = vrot.slane %v2448_v16, %v5804_v29  ;;  %v2463_v57 = vrot.slane %v2449_v54, %v5804_v29 }
 0x699   : > { %v2500_v59 = vcombine.low %v2476_v49, %v2492_v28  ;;  %v2501_v51 = vcombine.high %v2476_v49, %v2492_v28  ;;  %v2516_v19 = vcombine.low %v2483_v45, %v2499_v35  ;;  %v2517_v21 = vcombine.high %v2483_v45, %v2499_v35 }
 0x69a   : > { %v2552_v17 = vcombine.low %v2322_v42, %v2386_v52  ;;  %v2553_v60 = vcombine.high %v2322_v42, %v2386_v52  ;;  %v2944_v43 = vcombine.low %v2440_v23, %v2447_v30  ;;  %v4243_v14 = vcombine.high %v2440_v23, %v2447_v30 }
 0x69b   : > { %v2508_v56 = vrot.slane %v2500_v59, %v5804_v29  ;;  %v2515_v63 = vrot.slane %v2501_v51, %v5804_v29  ;;  %v2524_v55 = vrot.slane %v2516_v19, %v5804_v29  ;;  %v2531_v2 = vrot.slane %v2517_v21, %v5804_v29  ;;  %v2325_v21 = vpop.trf.xlu0 }
 0x69c   : > { %v2387_v10 = vpop.trf.xlu1  ;;  %v2560_v15 = vrot.slane %v2552_v17, %v5801_v11  ;;  %v2567_v32 = vrot.slane %v2553_v60, %v5801_v11  ;;  %v2960_v13 = vcombine.low %v2456_v18, %v2463_v57  ;;  %v4244_v62 = vcombine.high %v2456_v18, %v2463_v57 }
 0x69d   : > { %v2620_v41 = vcombine.low %v2323_v27, %v2387_v10  ;;  %v2621_v33 = vcombine.high %v2323_v27, %v2387_v10  ;;  %v3012_v7 = vcombine.low %v2508_v56, %v2515_v63  ;;  %v4245_v58 = vcombine.high %v2508_v56, %v2515_v63 }
 0x69e   : > { %v2568_v49 = vcombine.low %v5811_v4, %v2560_v15  ;;  %v2569_v45 = vcombine.high %v5811_v4, %v2560_v15  ;;  %v2584_v25 = vcombine.low %v5815_v39, %v2567_v32  ;;  %v2585_v0 = vcombine.high %v5815_v39, %v2567_v32 }
 0x69f   : > { %v2628_v5 = vrot.slane %v2620_v41, %v5801_v11  ;;  %v2635_v53 = vrot.slane %v2621_v33, %v5801_v11  ;;  %v3028_v61 = vcombine.low %v2524_v55, %v2531_v2  ;;  %v4246_v12 = vcombine.high %v2524_v55, %v2531_v2 }
 0x6a0   : > { %v2388_v42 = vpop.trf.xlu1  ;;  %v5879_v4 = vrot.slane %v2568_v49, %v5804_v29  ;;  %v2583_v36 = vrot.slane %v2569_v45, %v5804_v29  ;;  %v5883_v39 = vrot.slane %v2584_v25, %v5804_v29  ;;  %v2599_v3 = vrot.slane %v2585_v0, %v5804_v29 }
 0x6a1   : > { %v2636_v46 = vcombine.low %v5818_v34, %v2628_v5  ;;  %v2637_v1 = vcombine.high %v5818_v34, %v2628_v5  ;;  %v2652_v9 = vcombine.low %v5821_v8, %v2635_v53  ;;  %v2653_v37 = vcombine.high %v5821_v8, %v2635_v53 }
 0x6a2   : > { %v2951_v48 = vrot.slane %v2944_v43, %v5801_v11  ;;  %v2959_v24 = vrot.slane %v4243_v14, %v5801_v11  ;;  %v2967_v34 = vrot.slane %v2960_v13, %v5801_v11  ;;  %v2975_v16 = vrot.slane %v4244_v62, %v5801_v11 }
 0x6a3   : > { %v5891_v8 = vrot.slane %v3012_v7, %v5801_v11  ;;  %v5894_v54 = vrot.slane %v4245_v58, %v5801_v11  ;;  %v5897_v28 = vrot.slane %v3028_v61, %v5801_v11  ;;  %v5900_v35 = vrot.slane %v4246_v12, %v5801_v11  ;;  %v3613_v58 = vld [vmem:[%s4905_s20 + $0x18] sm:$0xff] }
 0x6a4   : > { %v2644_v52 = vrot.slane %v2636_v46, %v5804_v29  ;;  %v2651_v59 = vrot.slane %v2637_v1, %v5804_v29  ;;  %v2660_v51 = vrot.slane %v2652_v9, %v5804_v29  ;;  %v2667_v19 = vrot.slane %v2653_v37, %v5804_v29  ;;  %v2389_v27 = vpop.trf.xlu1  ;;  %v2326_v1 = vpop.trf.xlu0  ;;  %4516 = vmatprep.subr.mxu1 %v3613_v58 }
 0x6a5   : > { %v3080_v23 = vcombine.low %v5879_v4, %v2583_v36  ;;  %v4247_v30 = vcombine.high %v5879_v4, %v2583_v36  ;;  %v3096_v18 = vcombine.low %v5883_v39, %v2599_v3  ;;  %v4248_v57 = vcombine.high %v5883_v39, %v2599_v3  ;;  %4517 = vmatpush3.msra.mxu1 %v3613_v58 }
 0x6a6   : > { %v2688_v10 = vcombine.low %v2324_v26, %v2388_v42  ;;  %v2689_v17 = vcombine.high %v2324_v26, %v2388_v42  ;;  %v2976_v60 = vcombine.low %v2951_v48, %v2959_v24  ;;  %v2992_v41 = vcombine.low %v2967_v34, %v2975_v16 }
 0x6a7   : > { %v2756_v33 = vcombine.low %v2325_v21, %v2389_v27  ;;  %v2757_v56 = vcombine.high %v2325_v21, %v2389_v27  ;;  %v2977_v63 = vcombine.high %v2951_v48, %v2959_v24  ;;  %v2993_v55 = vcombine.high %v2967_v34, %v2975_v16 }
 0x6a8   : > { %v2696_v2 = vrot.slane %v2688_v10, %v5801_v11  ;;  %v2703_v15 = vrot.slane %v2689_v17, %v5801_v11  ;;  %v5913_v32 = vrot.slane %v2976_v60, %v5804_v29  ;;  %v5916_v5 = vrot.slane %v2992_v41, %v5804_v29  ;;  %v2390_v9 = vpop.trf.xlu1  ;;  %v3610_v10 = vld [vmem:[%s4905_s20] sm:$0xff] }
 0x6a9   : > { %v3148_v53 = vcombine.low %v2644_v52, %v2651_v59  ;;  %v4249_v43 = vcombine.high %v2644_v52, %v2651_v59  ;;  %v2764_v14 = vrot.slane %v2756_v33, %v5801_v11  ;;  %v2771_v13 = vrot.slane %v2757_v56, %v5801_v11  ;;  %v2327_v56 = vpop.trf.xlu0 }
 0x6aa   : > { %v2704_v62 = vcombine.low %v5835_v38, %v2696_v2  ;;  %v2705_v49 = vcombine.high %v5835_v38, %v2696_v2  ;;  %v2720_v45 = vcombine.low %v5838_v50, %v2703_v15  ;;  %v2721_v25 = vcombine.high %v5838_v50, %v2703_v15  ;;  %v3612_v50 = vld [vmem:[%s4905_s20 + $0x10] sm:$0xff] }
 0x6ab   : > { %v3164_v0 = vcombine.low %v2660_v51, %v2667_v19  ;;  %v3009_v26 = vcombine.high %v5913_v32, %v5916_v5  ;;  %v2991_v42 = vrot.slane %v2977_v63, %v5804_v29  ;;  %v3007_v7 = vrot.slane %v2993_v55, %v5804_v29  ;;  %4518 = vmatprep.subr.mxu1 %v3612_v50 }
 0x6ac   : > { %v4250_v61 = vcombine.high %v2660_v51, %v2667_v19  ;;  %v2772_v12 = vcombine.low %v5841_v22, %v2764_v14  ;;  %v2773_v46 = vcombine.high %v5841_v22, %v2764_v14  ;;  %v2788_v38 = vcombine.low %v5844_v40, %v2771_v13  ;;  %v3611_v51 = vld [vmem:[%s4905_s20 + $0x8] sm:$0xff]  ;;  %4519 = vmatpush3.msra.mxu1 %v3612_v50  ;;  %v2391_v63 = vpop.trf.xlu1 }
 0x6ad   : > { %v5934_v37 = vrot.slane %v2704_v62, %v5804_v29  ;;  %v5937_v4 = vrot.slane %v2705_v49, %v5804_v29  ;;  %v5940_v36 = vrot.slane %v2720_v45, %v5804_v29  ;;  %v5943_v39 = vrot.slane %v2721_v25, %v5804_v29  ;;  %3496 = vrot.lane.b32.xlu0 %v3009_v26, %s4811_s12 }
 0x6ae   : > { %v5947_v22 = vrot.slane %v3080_v23, %v5801_v11  ;;  %v5950_v3 = vrot.slane %v4247_v30, %v5801_v11  ;;  %v5953_v48 = vrot.slane %v3096_v18, %v5801_v11  ;;  %v5956_v24 = vrot.slane %v4248_v57, %v5801_v11  ;;  %4520 = vmatprep.subr.mxu1 %v3611_v51 }
 0x6af   : > { %v5959_v34 = vrot.slane %v3148_v53, %v5801_v11  ;;  %v5962_v16 = vrot.slane %v4249_v43, %v5801_v11  ;;  %v2789_v52 = vcombine.high %v5844_v40, %v2771_v13  ;;  %v3010_v59 = vcombine.low %v2991_v42, %v3007_v7  ;;  %4521 = vmatpush3.msra.mxu1 %v3611_v51 }
 0x6b0   : > { %v5967_v19 = vrot.slane %v3164_v0, %v5801_v11  ;;  %v5970_v21 = vrot.slane %v4250_v61, %v5801_v11  ;;  %v5973_v27 = vrot.slane %v2772_v12, %v5804_v29  ;;  %v5976_v23 = vrot.slane %v2773_v46, %v5804_v29  ;;  %4522 = vmatprep.subr.mxu1 %v3610_v10 }
 0x6b1   : > { %v3216_v30 = vcombine.low %v5934_v37, %v5937_v4  ;;  %v4251_v40 = vcombine.high %v5934_v37, %v5937_v4  ;;  %v3232_v18 = vcombine.low %v5940_v36, %v5943_v39  ;;  %v5985_v57 = vrot.slane %v2788_v38, %v5804_v29  ;;  %3528 = vrot.lane.b32.xlu0 %v3010_v59, %s4812_s14 }
 0x6b2   : > { %v3044_v17 = vcombine.low %v5891_v8, %v5894_v54  ;;  %v3060_v60 = vcombine.low %v5897_v28, %v5900_v35  ;;  %v2824_v41 = vcombine.low %v2326_v1, %v2390_v9  ;;  %v2825_v33 = vcombine.high %v2326_v1, %v2390_v9  ;;  %4523 = vmatpush3.msra.mxu1 %v3610_v10 }
 0x6b3   : > { %v4252_v55 = vcombine.high %v5940_v36, %v5943_v39  ;;  %v5996_v2 = vrot.slane %v2789_v52, %v5804_v29  ;;  %v3011_v15 = vcombine.high %v2991_v42, %v3007_v7  ;;  %v3045_v53 = vcombine.high %v5891_v8, %v5894_v54 }
 0x6b4   : > { %v6001_v43 = vrot.slane %v3044_v17, %v5804_v29  ;;  %v6004_v14 = vrot.slane %v3060_v60, %v5804_v29  ;;  %v2832_v13 = vrot.slane %v2824_v41, %v5801_v11  ;;  %v2839_v62 = vrot.slane %v2825_v33, %v5801_v11 }
 0x6b5   : > { %3560 = vrot.lane.b32.xlu0 %v3011_v15, %s4813_s15  ;;  %v3059_v49 = vrot.slane %v3045_v53, %v5804_v29  ;;  %v3061_v8 = vcombine.high %v5897_v28, %v5900_v35  ;;  %v2892_v54 = vcombine.low %v2327_v56, %v2391_v63  ;;  %v2893_v45 = vcombine.high %v2327_v56, %v2391_v63 }
 0x6b6   : > { %v3077_v25 = vcombine.high %v6001_v43, %v6004_v14  ;;  %v2840_v0 = vcombine.low %v5847_v44, %v2832_v13  ;;  %v2841_v26 = vcombine.high %v5847_v44, %v2832_v13  ;;  %v2856_v42 = vcombine.low %v5850_v47, %v2839_v62 }
 0x6b7   : > { %v2857_v7 = vcombine.high %v5850_v47, %v2839_v62  ;;  %v3075_v58 = vrot.slane %v3061_v8, %v5804_v29  ;;  %v2900_v61 = vrot.slane %v2892_v54, %v5801_v11  ;;  %v2907_v28 = vrot.slane %v2893_v45, %v5801_v11 }
 0x6b8   : > { %v6022_v35 = vrot.slane %v3216_v30, %v5801_v11  ;;  %v3284_v12 = vcombine.low %v5973_v27, %v5976_v23  ;;  %v4253_v44 = vcombine.high %v5973_v27, %v5976_v23  ;;  %v3300_v46 = vcombine.low %v5985_v57, %v5996_v2  ;;  %3498 = vrot.lane.b32.xlu1 %v3077_v25, %s4811_s12 }
 0x6b9   : > { %v2848_v47 = vrot.slane %v2840_v0, %v5804_v29  ;;  %v2855_v38 = vrot.slane %v2841_v26, %v5804_v29  ;;  %v2908_v1 = vcombine.low %v5853_v6, %v2900_v61  ;;  %v2909_v9 = vcombine.high %v5853_v6, %v2900_v61 }
 0x6ba   : > { %v6036_v50 = vrot.slane %v4251_v40, %v5801_v11  ;;  %v3078_v37 = vcombine.low %v3059_v49, %v3075_v58  ;;  %v2924_v4 = vcombine.low %v5856_v20, %v2907_v28  ;;  %v2925_v36 = vcombine.high %v5856_v20, %v2907_v28 }
 0x6bb   : > { %v6041_v39 = vrot.slane %v3232_v18, %v5801_v11  ;;  %v2864_v52 = vrot.slane %v2856_v42, %v5804_v29  ;;  %v2871_v59 = vrot.slane %v2857_v7, %v5804_v29  ;;  %v3112_v51 = vcombine.low %v5947_v22, %v5950_v3 }
 0x6bc   : > { %v6048_v6 = vrot.slane %v4252_v55, %v5801_v11  ;;  %v6051_v27 = vrot.slane %v3284_v12, %v5801_v11  ;;  %3530 = vrot.lane.b32.xlu1 %v3078_v37, %s4812_s14  ;;  %v2916_v20 = vrot.slane %v2908_v1, %v5804_v29  ;;  %v2923_v23 = vrot.slane %v2909_v9, %v5804_v29 }
 0x6bd   : > { %v6057_v30 = vrot.slane %v4253_v44, %v5801_v11  ;;  %v6060_v40 = vrot.slane %v3300_v46, %v5801_v11  ;;  %v4254_v18 = vcombine.high %v5985_v57, %v5996_v2  ;;  %v3352_v10 = vcombine.low %v2848_v47, %v2855_v38 }
 0x6be   : > { %v4255_v17 = vcombine.high %v2848_v47, %v2855_v38  ;;  %v2932_v60 = vrot.slane %v2924_v4, %v5804_v29  ;;  %v2939_v41 = vrot.slane %v2925_v36, %v5804_v29  ;;  %v3079_v33 = vcombine.high %v3059_v49, %v3075_v58 }
 0x6bf   : > { %v3368_v56 = vcombine.low %v2864_v52, %v2871_v59  ;;  %v6067_v63 = vrot.slane %v3112_v51, %v5804_v29  ;;  %v3128_v55 = vcombine.low %v5953_v48, %v5956_v24  ;;  %v3113_v15 = vcombine.high %v5947_v22, %v5950_v3 }
 0x6c0   : > { %v4256_v53 = vcombine.high %v2864_v52, %v2871_v59  ;;  %v3420_v13 = vcombine.low %v2916_v20, %v2923_v23  ;;  %3562 = vrot.lane.b32.xlu1 %v3079_v33, %s4813_s15  ;;  %v3129_v57 = vcombine.high %v5953_v48, %v5956_v24  ;;  %v3180_v2 = vcombine.low %v5959_v34, %v5962_v16 }
 0x6c1   : > { %v4257_v62 = vcombine.high %v2916_v20, %v2923_v23  ;;  %v6079_v49 = vrot.slane %v3128_v55, %v5804_v29  ;;  %v3196_v8 = vcombine.low %v5967_v19, %v5970_v21  ;;  %v3181_v22 = vcombine.high %v5959_v34, %v5962_v16 }
 0x6c2   : > { %v3436_v3 = vcombine.low %v2932_v60, %v2939_v41  ;;  %v4258_v54 = vcombine.high %v2932_v60, %v2939_v41  ;;  %v6086_v45 = vrot.slane %v3180_v2, %v5804_v29  ;;  %v3197_v48 = vcombine.high %v5967_v19, %v5970_v21 }
 0x6c3   : > { %v3145_v24 = vcombine.high %v6067_v63, %v6079_v49  ;;  %v3127_v25 = vrot.slane %v3113_v15, %v5804_v29  ;;  %v3143_v0 = vrot.slane %v3129_v57, %v5804_v29  ;;  %v6095_v26 = vrot.slane %v3196_v8, %v5804_v29 }
 0x6c4   : > { %v3315_v34 = vrot.slane %v4254_v18, %v5801_v11  ;;  %v6099_v16 = vrot.slane %v3352_v10, %v5801_v11  ;;  %v6102_v42 = vrot.slane %v4255_v17, %v5801_v11  ;;  %v6105_v19 = vrot.slane %v3368_v56, %v5801_v11 }
 0x6c5   : > { %v6108_v21 = vrot.slane %v4256_v53, %v5801_v11  ;;  %3500 = vrot.lane.b32.xlu0 %v3145_v24, %s4811_s12  ;;  %v3213_v7 = vcombine.high %v6086_v45, %v6095_v26  ;;  %v3195_v58 = vrot.slane %v3181_v22, %v5804_v29  ;;  %v3211_v61 = vrot.slane %v3197_v48, %v5804_v29 }
 0x6c6   : > { %v6116_v28 = vrot.slane %v3420_v13, %v5801_v11  ;;  %v3248_v12 = vcombine.low %v6022_v35, %v6036_v50  ;;  %v3264_v44 = vcombine.low %v6041_v39, %v6048_v6  ;;  %v6123_v46 = vrot.slane %v4257_v62, %v5801_v11 }
 0x6c7   : > { %v6126_v47 = vrot.slane %v3436_v3, %v5801_v11  ;;  %v6129_v38 = vrot.slane %v4258_v54, %v5801_v11  ;;  %v3146_v1 = vcombine.low %v3127_v25, %v3143_v0  ;;  %3502 = vrot.lane.b32.xlu1 %v3213_v7, %s4811_s12  ;;  %v3316_v9 = vcombine.low %v6051_v27, %v6057_v30 }
 0x6c8   : > { %v3332_v37 = vcombine.low %v6060_v40, %v3315_v34  ;;  %v3214_v4 = vcombine.low %v3195_v58, %v3211_v61  ;;  %v3384_v36 = vcombine.low %v6099_v16, %v6102_v42  ;;  %v3400_v52 = vcombine.low %v6105_v19, %v6108_v21 }
 0x6c9   : > { %3532 = vrot.lane.b32.xlu0 %v3146_v1, %s4812_s14  ;;  %v3147_v59 = vcombine.high %v3127_v25, %v3143_v0  ;;  %v6141_v11 = vrot.slane %v3248_v12, %v5804_v29  ;;  %v6144_v51 = vrot.slane %v3264_v44, %v5804_v29  ;;  %v3249_v20 = vcombine.high %v6022_v35, %v6036_v50 }
 0x6ca   : > { %v3265_v23 = vcombine.high %v6041_v39, %v6048_v6  ;;  %v3317_v18 = vcombine.high %v6051_v27, %v6057_v30  ;;  %v3452_v10 = vcombine.low %v6116_v28, %v6123_v46  ;;  %v3468_v17 = vcombine.low %v6126_v47, %v6129_v38 }
 0x6cb   : > { %3534 = vrot.lane.b32.xlu1 %v3214_v4, %s4812_s14  ;;  %v3215_v60 = vcombine.high %v3195_v58, %v3211_v61  ;;  %v6158_v41 = vrot.slane %v3316_v9, %v5804_v29  ;;  %v6161_v35 = vrot.slane %v3332_v37, %v5804_v29  ;;  %v3333_v50 = vcombine.high %v6060_v40, %v3315_v34 }
 0x6cc   : > { %v6166_v39 = vrot.slane %v3384_v36, %v5804_v29  ;;  %v6169_v6 = vrot.slane %v3400_v52, %v5804_v29  ;;  %v6172_v27 = vrot.slane %v3452_v10, %v5804_v29  ;;  %v6175_v30 = vrot.slane %v3468_v17, %v5804_v29 }
 0x6cd   : > { %3564 = vrot.lane.b32.xlu0 %v3147_v59, %s4813_s15  ;;  %v3281_v33 = vcombine.high %v6141_v11, %v6144_v51  ;;  %v3008_v40 = vcombine.low %v5913_v32, %v5916_v5  ;;  %v3263_v56 = vrot.slane %v3249_v20, %v5804_v29  ;;  %v3279_v55 = vrot.slane %v3265_v23, %v5804_v29 }
 0x6ce   : > { %v3331_v15 = vrot.slane %v3317_v18, %v5804_v29  ;;  %v3076_v53 = vcombine.low %v6001_v43, %v6004_v14  ;;  %v3349_v13 = vcombine.high %v6158_v41, %v6161_v35  ;;  %v3347_v57 = vrot.slane %v3333_v50, %v5804_v29 }
 0x6cf   : > { %3566 = vrot.lane.b32.xlu1 %v3215_v60, %s4813_s15  ;;  %v3144_v2 = vcombine.low %v6067_v63, %v6079_v49  ;;  %v3212_v32 = vcombine.low %v6086_v45, %v6095_v26  ;;  %v3280_v5 = vcombine.low %v6141_v11, %v6144_v51  ;;  %v3348_v62 = vcombine.low %v6158_v41, %v6161_v35 }
 0x6d0   : > { %v3416_v43 = vcombine.low %v6166_v39, %v6169_v6  ;;  %v3484_v14 = vcombine.low %v6172_v27, %v6175_v30  ;;  %v3282_v8 = vcombine.low %v3263_v56, %v3279_v55  ;;  %v3350_v63 = vcombine.low %v3331_v15, %v3347_v57 }
 0x6d1   : > { %3504 = vrot.lane.b32.xlu0 %v3281_v33, %s4811_s12  ;;  %v3283_v49 = vcombine.high %v3263_v56, %v3279_v55  ;;  %v3385_v22 = vcombine.high %v6099_v16, %v6102_v42  ;;  %v3401_v3 = vcombine.high %v6105_v19, %v6108_v21  ;;  %v3351_v54 = vcombine.high %v3331_v15, %v3347_v57 }
 0x6d2   : > { %v3453_v45 = vcombine.high %v6116_v28, %v6123_v46  ;;  %v3469_v48 = vcombine.high %v6126_v47, %v6129_v38  ;;  %v3417_v24 = vcombine.high %v6166_v39, %v6169_v6  ;;  %v3485_v26 = vcombine.high %v6172_v27, %v6175_v30 }
 0x6d3   : > { %3506 = vrot.lane.b32.xlu1 %v3349_v13, %s4811_s12  ;;  %v3399_v25 = vrot.slane %v3385_v22, %v5804_v29  ;;  %v3415_v0 = vrot.slane %v3401_v3, %v5804_v29 }
 0x6d4   : > { %v3467_v34 = vrot.slane %v3453_v45, %v5804_v29  ;;  %v3483_v16 = vrot.slane %v3469_v48, %v5804_v29 }
 0x6d5   : > { %3536 = vrot.lane.b32.xlu0 %v3282_v8, %s4812_s14  ;;  %v3418_v42 = vcombine.low %v3399_v25, %v3415_v0  ;;  %v3419_v21 = vcombine.high %v3399_v25, %v3415_v0  ;;  %v3814_v25 = vld [vmem:[%s4910_s7 + $0x38] sm:$0xff]  ;;  %v3813_v0 = vld [vmem:[%s4910_s7 + $0x30] sm:$0xff] }
 0x6d6   : > { %v3486_v19 = vcombine.low %v3467_v34, %v3483_v16  ;;  %v3487_v7 = vcombine.high %v3467_v34, %v3483_v16  ;;  %4536 = vmatprep.subr.mxu0 %v3814_v25  ;;  %v3812_v34 = vld [vmem:[%s4910_s7 + $0x28] sm:$0xff] }
 0x6d7   : > { %3538 = vrot.lane.b32.xlu1 %v3350_v63, %s4812_s14  ;;  %4537 = vmatpush3.msra.mxu0 %v3814_v25 }
 0x6d8   : > { %4538 = vmatprep.subr.mxu0 %v3813_v0 }
 0x6d9   : > { %3568 = vrot.lane.b32.xlu0 %v3283_v49, %s4813_s15  ;;  %4539 = vmatpush3.msra.mxu0 %v3813_v0  ;;  %v6478_v0 = vld [vmem:[#allocation19_spill] sm:$0xff] }
 0x6da   : > { %4540 = vmatprep.subr.mxu0 %v3812_v34 }
 0x6db   : > { %3570 = vrot.lane.b32.xlu1 %v3351_v54, %s4813_s15  ;;  %4541 = vmatpush3.msra.mxu0 %v3812_v34  ;;  %v6479_v34 = vld [vmem:[#allocation18_spill] sm:$0xff] }
 0x6dd   : > { %3508 = vrot.lane.b32.xlu0 %v3417_v24, %s4811_s12 }
 0x6df   : > { %3510 = vrot.lane.b32.xlu1 %v3485_v26, %s4811_s12 }
 0x6e1   : > { %3540 = vrot.lane.b32.xlu0 %v3418_v42, %s4812_s14  ;;  %v3811_v42 = vld [vmem:[%s4910_s7 + $0x20] sm:$0xff] }
 0x6e2   : > { %4542 = vmatprep.subr.mxu0 %v3811_v42 }
 0x6e3   : > { %3542 = vrot.lane.b32.xlu1 %v3486_v19, %s4812_s14  ;;  %v3810_v19 = vld [vmem:[%s4910_s7 + $0x18] sm:$0xff]  ;;  %4543 = vmatpush3.msra.mxu0 %v3811_v42 }
 0x6e4   : > { %4544 = vmatprep.subr.mxu0 %v3810_v19 }
 0x6e5   : > { %3572 = vrot.lane.b32.xlu0 %v3419_v21, %s4813_s15  ;;  %4545 = vmatpush3.msra.mxu0 %v3810_v19  ;;  %v3809_v21 = vld [vmem:[%s4910_s7 + $0x10] sm:$0xff] }
 0x6e6   : > { %4546 = vmatprep.subr.mxu0 %v3809_v21  ;;  %v6480_v19 = vld [vmem:[#allocation6_spill] sm:$0xff] }
 0x6e7   : > { %3574 = vrot.lane.b32.xlu1 %v3487_v7, %s4813_s15  ;;  %v3808_v7 = vld [vmem:[%s4910_s7 + $0x8] sm:$0xff]  ;;  %4547 = vmatpush3.msra.mxu0 %v3809_v21 }
 0x6e8   : > { %4548 = vmatprep.subr.mxu0 %v3808_v7 }
 0x6e9   : > { %4549 = vmatpush3.msra.mxu0 %v3808_v7 }
 0x71f   : > { %v3497_v58 = vpop.permute.xlu0 %3496 }
 0x720   : > { %v3584_v29 = vsel %vm822_vm2, %v3008_v40, %v3497_v58  ;;  %v400_v58 = vsub.s32 1, %v6464_v31 }
 0x723   : > { %v3529_v61 = vpop.permute.xlu0 %3528 }
 0x724   : > { %v3593_v28 = vsel %vm3592_vm5, %v3584_v29, %v3529_v61  ;;  %v3807_v61 = vld [vmem:[%s4910_s7] sm:$0xff] }
 0x725   : > { %v4753_v29 = vld [vmem:[%s4899_s16] sm:$0x3]  ;;  %4550 = vmatprep.subr.mxu0 %v3807_v61 }
 0x726   : > { %4551 = vmatpush3.msra.mxu0 %v3807_v61 }
 0x727   : > { %v3561_v12 = vpop.permute.xlu0 %3560 }
 0x728   : > { %v3602_v44 = vsel %vm3601_vm6, %v3593_v28, %v3561_v12  ;;  %v401_v28 = vrot.slane %v4753_v29, %v400_v58  ;;  %v6465_v12 = vld [vmem:[#allocation9_spill] sm:$0xff] }
 0x729   : > { %4524 = vmatprep.mubr.msk.f32.mxu1 %vm404_vm1, %v3602_v44 }
 0x72a   : > { %v3499_v46 = vpop.permute.xlu1 %3498  ;;  %v504_v44 = vadd.f32 %v6465_v12, %v401_v28 }
 0x72b   : > { %v3585_v38 = vsel %vm822_vm2, %v3076_v53, %v3499_v46 }
 0x72e   : > { %v3531_v47 = vpop.permute.xlu1 %3530 }
 0x72f   : > { %v3594_v1 = vsel %vm3592_vm5, %v3585_v38, %v3531_v47  ;;  %v6466_v47 = vld [vmem:[#allocation7_spill] sm:$0xff] }
 0x730   : > { %v498_v38 = vadd.f32 %v6466_v47, %v401_v28 }
 0x732   : > { %v3563_v9 = vpop.permute.xlu1 %3562 }
 0x733   : > { %v3603_v37 = vsel %vm3601_vm6, %v3594_v1, %v3563_v9  ;;  %v6467_v1 = vld [vmem:[#allocation8_spill] sm:$0xff] }
 0x734   : > { %4525 = vmatmul.mubr.msk.f32.vlgmr.msra.gmra.mxu1 %vm404_vm1, %v3603_v37 }
 0x737   : > { %v3501_v4 = vpop.permute.xlu0 %3500 }
 0x738   : > { %v3586_v20 = vsel %vm822_vm2, %v3144_v2, %v3501_v4 }
 0x739   : > { %v3503_v36 = vpop.permute.xlu1 %3502 }
 0x73a   : > { %v3587_v10 = vsel %vm822_vm2, %v3212_v32, %v3503_v36 }
 0x73b   : > { %v3533_v52 = vpop.permute.xlu0 %3532 }
 0x73c   : > { %v3595_v23 = vsel %vm3592_vm5, %v3586_v20, %v3533_v52  ;;  %v6468_v52 = vld [vmem:[#allocation5_spill] sm:$0xff] }
 0x73d   : > { %v3535_v59 = vpop.permute.xlu1 %3534 }
 0x73e   : > { %v3596_v60 = vsel %vm3592_vm5, %v3587_v10, %v3535_v59  ;;  %v6469_v10 = vld [vmem:[#allocation12_spill] sm:$0xff] }
 0x73f   : > { %v3565_v18 = vpop.permute.xlu0 %3564 }
 0x740   : > { %v3604_v17 = vsel %vm3601_vm6, %v3595_v23, %v3565_v18 }
 0x741   : > { %4527 = vmatprep.mubr.msk.f32.mxu1 %vm404_vm1, %v3604_v17  ;;  %v3567_v50 = vpop.permute.xlu1 %3566  ;;  %v516_v17 = vadd.f32 %v6469_v10, %v401_v28 }
 0x742   : > { %v3605_v33 = vsel %vm3601_vm6, %v3596_v60, %v3567_v50  ;;  %v6470_v50 = vld [vmem:[#allocation11_spill] sm:$0xff] }
 0x743   : > { %v3505_v40 = vpop.permute.xlu0 %3504  ;;  %4528 = vmatmul.mubr.msk.f32.gmra.mxu1 %vm404_vm1, %v3605_v33  ;;  %v510_v33 = vadd.f32 %v6470_v50, %v401_v28 }
 0x744   : > { %v3588_v53 = vsel %vm822_vm2, %v3280_v5, %v3505_v40  ;;  %v6471_v40 = vld [vmem:[#allocation13_spill] sm:$0xff] }
 0x745   : > { %v3507_v56 = vpop.permute.xlu1 %3506 }
 0x746   : > { %v3589_v2 = vsel %vm822_vm2, %v3348_v62, %v3507_v56 }
 0x747   : > { %v3537_v55 = vpop.permute.xlu0 %3536 }
 0x748   : > { %v3597_v13 = vsel %vm3592_vm5, %v3588_v53, %v3537_v55 }
 0x749   : > { %v3539_v15 = vpop.permute.xlu1 %3538 }
 0x74a   : > { %v3598_v8 = vsel %vm3592_vm5, %v3589_v2, %v3539_v15 }
 0x74b   : > { %v3569_v57 = vpop.permute.xlu0 %3568 }
 0x74c   : > { %v3606_v32 = vsel %vm3601_vm6, %v3597_v13, %v3569_v57  ;;  %v6472_v57 = vld [vmem:[#allocation10_spill] sm:$0xff] }
 0x74d   : > { %4530 = vmatprep.mubr.msk.f32.mxu1 %vm404_vm1, %v3606_v32  ;;  %v3571_v63 = vpop.permute.xlu1 %3570 }
 0x74e   : > { %v3607_v49 = vsel %vm3601_vm6, %v3598_v8, %v3571_v63 }
 0x74f   : > { %v3509_v11 = vpop.permute.xlu0 %3508  ;;  %4531 = vmatmul.mubr.msk.f32.gmra.mxu1 %vm404_vm1, %v3607_v49  ;;  %v6473_v49 = vld [vmem:[#allocation16_spill] sm:$0xff] }
 0x750   : > { %v3590_v41 = vsel %vm822_vm2, %v3416_v43, %v3509_v11  ;;  %v528_v11 = vadd.f32 %v6473_v49, %v401_v28 }
 0x751   : > { %v3511_v51 = vpop.permute.xlu1 %3510 }
 0x752   : > { %v3591_v3 = vsel %vm822_vm2, %v3484_v14, %v3511_v51 }
 0x753   : > { %v3541_v5 = vpop.permute.xlu0 %3540 }
 0x754   : > { %v3599_v35 = vsel %vm3592_vm5, %v3590_v41, %v3541_v5  ;;  %v6474_v5 = vld [vmem:[#allocation15_spill] sm:$0xff]  ;;  %v6475_v41 = vld [vmem:[#allocation17_spill] sm:$0xff] }
 0x755   : > { %v3543_v22 = vpop.permute.xlu1 %3542 }
 0x756   : > { %v3600_v45 = vsel %vm3592_vm5, %v3591_v3, %v3543_v22  ;;  %v522_v22 = vadd.f32 %v6474_v5, %v401_v28 }
 0x757   : > { %v3573_v62 = vpop.permute.xlu0 %3572 }
 0x758   : > { %v3608_v54 = vsel %vm3601_vm6, %v3599_v35, %v3573_v62 }
 0x759   : > { %4533 = vmatprep.mubr.msk.f32.mxu1 %vm404_vm1, %v3608_v54  ;;  %v3575_v48 = vpop.permute.xlu1 %3574 }
 0x75a   : > { %v3609_v39 = vsel %vm3601_vm6, %v3600_v45, %v3575_v48  ;;  %v6476_v48 = vld [vmem:[#allocation14_spill] sm:$0xff] }
 0x75b   : > { %4534 = vmatmul.mubr.msk.f32.gmra.mxu1 %vm404_vm1, %v3609_v39 }
 0x7f4   : > { %v4526_v6 = vpop.f32.mrf.mxu1 }
 0x7f5   : > { %3753 = vrot.lane.b32.xlu1 %v4526_v6, %s4806_s8 }
 0x7f6   : > { %v3704_v27 = vpop.f32.mrf.mxu1 }
 0x7f7   : > { %3751 = vrot.lane.b32.xlu0 %v3704_v27, %s4806_s8 }
 0x803   : > { %v4529_v30 = vpop.f32.mrf.mxu1 }
 0x804   : > { %3757 = vrot.lane.b32.xlu1 %v4529_v30, %s4806_s8 }
 0x805   : > { %v3714_v43 = vpop.f32.mrf.mxu1 }
 0x806   : > { %3755 = vrot.lane.b32.xlu0 %v3714_v43, %s4806_s8  ;;  %v6477_v43 = vld [vmem:[#allocation21_spill] sm:$0xff] }
 0x80f   : > { %v4532_v14 = vpop.f32.mrf.mxu1 }
 0x810   : > { %3761 = vrot.lane.b32.xlu1 %v4532_v14, %s4806_s8  ;;  %v534_v14 = vadd.f32 %v6477_v43, %v401_v28 }
 0x811   : > { %v3724_v24 = vpop.f32.mrf.mxu1 }
 0x812   : > { %3759 = vrot.lane.b32.xlu0 %v3724_v24, %s4806_s8 }
 0x81b   : > { %v4535_v26 = vpop.f32.mrf.mxu1 }
 0x81c   : > { %3765 = vrot.lane.b32.xlu1 %v4535_v26, %s4806_s8  ;;  %v540_v26 = vadd.f32 %v6478_v0, %v401_v28  ;;  %v4760_v0 = vld [vmem:[#allocation2 + $0x38] sm:$0xff] }
 0x81d   : > { %v3734_v16 = vpop.f32.mrf.mxu1 }
 0x81e   : > { %3763 = vrot.lane.b32.xlu0 %v3734_v16, %s4806_s8 }
 0x867   : > { %v3754_v46 = vpop.permute.xlu1 %3753 }
 0x868   : > { %v3777_v9 = vadd.f32 %v3754_v46, %v6467_v1  ;;  %v3778_v37 = vadd.f32 %v3754_v46, %v504_v44 }
 0x869   : > { %v3752_v4 = vpop.permute.xlu0 %3751 }
 0x86a   : > { %v3793_v36 = vmax.f32 %v3777_v9, 0.0  ;;  %v3794_v31 = vmax.f32 %v3778_v37, 0.0  ;;  %v3775_v59 = vadd.f32 %v3752_v4, %v6468_v52  ;;  %v3776_v20 = vadd.f32 %v3752_v4, %v498_v38 }
 0x86c   : > { %3844 = vrot.lane.b32.xlu1 %v3794_v31, %s4814_s17  ;;  %3842 = vrot.lane.b32.xlu0 %v3793_v36, %s4814_s17  ;;  %v3791_v23 = vmax.f32 %v3775_v59, 0.0  ;;  %v3792_v18 = vmax.f32 %v3776_v20, 0.0 }
 0x870   : > { %3840 = vrot.lane.b32.xlu1 %v3792_v18, %s4814_s17  ;;  %3838 = vrot.lane.b32.xlu0 %v3791_v23, %s4814_s17 }
 0x876   : > { %v3758_v60 = vpop.permute.xlu1 %3757 }
 0x877   : > { %v3781_v56 = vadd.f32 %v3758_v60, %v6471_v40  ;;  %v3782_v55 = vadd.f32 %v3758_v60, %v516_v17 }
 0x878   : > { %v3756_v15 = vpop.permute.xlu0 %3755 }
 0x879   : > { %v3797_v53 = vmax.f32 %v3781_v56, 0.0  ;;  %v3798_v13 = vmax.f32 %v3782_v55, 0.0  ;;  %v3779_v2 = vadd.f32 %v3756_v15, %v6472_v57  ;;  %v3780_v32 = vadd.f32 %v3756_v15, %v510_v33  ;;  %v4267_v15 = vld [vmem:[%s349_s0] ss:$0 sm:$0xff] }
 0x87b   : > { %3852 = vrot.lane.b32.xlu1 %v3798_v13, %s4814_s17  ;;  %3850 = vrot.lane.b32.xlu0 %v3797_v53, %s4814_s17  ;;  %v3795_v8 = vmax.f32 %v3779_v2, 0.0  ;;  %v3796_v63 = vmax.f32 %v3780_v32, 0.0  ;;  %v4754_v2 = vld [vmem:[#allocation2 + $0x8] sm:$0xff] }
 0x87f   : > { %3848 = vrot.lane.b32.xlu1 %v3796_v63, %s4814_s17  ;;  %3846 = vrot.lane.b32.xlu0 %v3795_v8, %s4814_s17  ;;  %v4755_v63 = vld [vmem:[#allocation2] sm:$0xff] }
 0x882   : > { %v3762_v51 = vpop.permute.xlu1 %3761 }
 0x883   : > { %v3785_v35 = vadd.f32 %v3762_v51, %v6475_v41  ;;  %v3786_v62 = vadd.f32 %v3762_v51, %v528_v11 }
 0x884   : > { %v3760_v3 = vpop.permute.xlu0 %3759 }
 0x885   : > { %v3801_v54 = vmax.f32 %v3785_v35, 0.0  ;;  %v3802_v45 = vmax.f32 %v3786_v62, 0.0  ;;  %v3783_v39 = vadd.f32 %v3760_v3, %v6476_v48  ;;  %v3784_v6 = vadd.f32 %v3760_v3, %v522_v22  ;;  %v4756_v22 = vld [vmem:[#allocation2 + $0x18] sm:$0xff]  ;;  %v4757_v62 = vld [vmem:[#allocation2 + $0x10] sm:$0xff] }
 0x887   : > { %3860 = vrot.lane.b32.xlu1 %v3802_v45, %s4814_s17  ;;  %3858 = vrot.lane.b32.xlu0 %v3801_v54, %s4814_s17  ;;  %v3799_v27 = vmax.f32 %v3783_v39, 0.0  ;;  %v3800_v30 = vmax.f32 %v3784_v6, 0.0  ;;  %v4758_v39 = vld [vmem:[#allocation2 + $0x28] sm:$0xff] }
 0x88b   : > { %3856 = vrot.lane.b32.xlu1 %v3800_v30, %s4814_s17  ;;  %3854 = vrot.lane.b32.xlu0 %v3799_v27, %s4814_s17  ;;  %v4759_v30 = vld [vmem:[#allocation2 + $0x20] sm:$0xff] }
 0x88e   : > { %v3766_v24 = vpop.permute.xlu1 %3765 }
 0x88f   : > { %v3789_v21 = vadd.f32 %v3766_v24, %v6480_v19  ;;  %v3790_v7 = vadd.f32 %v3766_v24, %v540_v26 }
 0x890   : > { %v3764_v25 = vpop.permute.xlu0 %3763 }
 0x891   : > { %v3787_v16 = vadd.f32 %v3764_v25, %v6479_v34  ;;  %v3788_v42 = vadd.f32 %v3764_v25, %v534_v14  ;;  %v3805_v29 = vmax.f32 %v3789_v21, 0.0  ;;  %v3806_v12 = vmax.f32 %v3790_v7, 0.0 }
 0x893   : > { %v3803_v58 = vmax.f32 %v3787_v16, 0.0  ;;  %v3804_v61 = vmax.f32 %v3788_v42, 0.0  ;;  %v4761_v16 = vld [vmem:[#allocation2 + $0x30] sm:$0xff] }
 0x895   : > { %3864 = vrot.lane.b32.xlu1 %v3804_v61, %s4814_s17  ;;  %3862 = vrot.lane.b32.xlu0 %v3803_v58, %s4814_s17 }
 0x899   : > { %3868 = vrot.lane.b32.xlu1 %v3806_v12, %s4814_s17  ;;  %3866 = vrot.lane.b32.xlu0 %v3805_v29, %s4814_s17 }
 0x8de   : > { %v3843_v44 = vpop.permute.xlu0 %3842  ;;  %v3845_v28 = vpop.permute.xlu1 %3844 }
 0x8df   : > { %v3871_v1 = vsel %vm404_vm1, %v3843_v44, %v3845_v28 }
 0x8e2   : > { %v3839_v46 = vpop.permute.xlu0 %3838  ;;  %v3841_v47 = vpop.permute.xlu1 %3840 }
 0x8e3   : > { %v3870_v38 = vsel %vm404_vm1, %v3839_v46, %v3841_v47 }
 0x8e4   : > { %4552 = vmatprep.mubr.msk.f32.mxu0 %vm1307_vm3, %v3870_v38 }
 0x8e5   : > { %4553 = vmatmul.mubr.msk.f32.vlgmr.msra.gmra.mxu0 %vm1307_vm3, %v3871_v1 }
 0x8ed   : > { %v3851_v9 = vpop.permute.xlu0 %3850  ;;  %v3853_v37 = vpop.permute.xlu1 %3852 }
 0x8ee   : > { %v3873_v52 = vsel %vm404_vm1, %v3851_v9, %v3853_v37 }
 0x8f1   : > { %v3847_v4 = vpop.permute.xlu0 %3846  ;;  %v3849_v36 = vpop.permute.xlu1 %3848 }
 0x8f2   : > { %v3872_v31 = vsel %vm404_vm1, %v3847_v4, %v3849_v36 }
 0x8f3   : > { %4555 = vmatprep.mubr.msk.f32.mxu0 %vm1307_vm3, %v3872_v31 }
 0x8f4   : > { %4556 = vmatmul.mubr.msk.f32.gmra.mxu0 %vm1307_vm3, %v3873_v52 }
 0x8f9   : > { %v3859_v59 = vpop.permute.xlu0 %3858  ;;  %v3861_v20 = vpop.permute.xlu1 %3860 }
 0x8fa   : > { %v3875_v17 = vsel %vm404_vm1, %v3859_v59, %v3861_v20 }
 0x8fd   : > { %v3855_v23 = vpop.permute.xlu0 %3854  ;;  %v3857_v18 = vpop.permute.xlu1 %3856 }
 0x8fe   : > { %v3874_v10 = vsel %vm404_vm1, %v3855_v23, %v3857_v18 }
 0x8ff   : > { %4558 = vmatprep.mubr.msk.f32.mxu0 %vm1307_vm3, %v3874_v10 }
 0x900   : > { %4559 = vmatmul.mubr.msk.f32.gmra.mxu0 %vm1307_vm3, %v3875_v17 }
 0x907   : > { %v3863_v60 = vpop.permute.xlu0 %3862  ;;  %v3865_v50 = vpop.permute.xlu1 %3864 }
 0x908   : > { %v3876_v33 = vsel %vm404_vm1, %v3863_v60, %v3865_v50 }
 0x909   : > { %4561 = vmatprep.mubr.msk.f32.mxu0 %vm1307_vm3, %v3876_v33 }
 0x90b   : > { %v3867_v40 = vpop.permute.xlu0 %3866  ;;  %v3869_v56 = vpop.permute.xlu1 %3868 }
 0x90c   : > { %v3877_v55 = vsel %vm404_vm1, %v3867_v40, %v3869_v56 }
 0x90d   : > { %4562 = vmatmul.mubr.msk.f32.gmra.mxu0 %vm1307_vm3, %v3877_v55 }
 0x9a5   : > { %v4554_v53 = vpop.f32.mrf.mxu0 }
 0x9a6   : > { %v3966_v13 = vadd.f32 %v4554_v53, %v4267_v15 }
 0x9a7   : > { %v3960_v57 = vpop.f32.mrf.mxu0 }
 0x9a8   : > { %v4000_v32 = vadd.f32 %v4754_v2, %v3966_v13  ;;  %v3961_v8 = vadd.f32 %v4267_v15, %v3960_v57 }
 0x9aa   : > { %4008 = vst.msk [vmem:[#allocation2 + $0x8] sm:$0xff] %vm404_vm1, %v4000_v32  ;;  %v3999_v49 = vadd.f32 %v4755_v63, %v3961_v8 }
 0x9ac   : > { %4007 = vst.msk [vmem:[#allocation2] sm:$0xff] %vm404_vm1, %v3999_v49 }
 0x9b4   : > { %v4557_v11 = vpop.f32.mrf.mxu0 }
 0x9b5   : > { %v3976_v51 = vadd.f32 %v4557_v11, %v4267_v15 }
 0x9b6   : > { %v3970_v5 = vpop.f32.mrf.mxu0 }
 0x9b7   : > { %v4002_v41 = vadd.f32 %v4756_v22, %v3976_v51  ;;  %v3971_v35 = vadd.f32 %v4267_v15, %v3970_v5 }
 0x9b9   : > { %4010 = vst.msk [vmem:[#allocation2 + $0x18] sm:$0xff] %vm404_vm1, %v4002_v41  ;;  %v4001_v3 = vadd.f32 %v4757_v62, %v3971_v35 }
 0x9bb   : > { %4009 = vst.msk [vmem:[#allocation2 + $0x10] sm:$0xff] %vm404_vm1, %v4001_v3 }
 0x9c0   : > { %v4560_v54 = vpop.f32.mrf.mxu0 }
 0x9c1   : > { %v3986_v45 = vadd.f32 %v4560_v54, %v4267_v15 }
 0x9c2   : > { %v3980_v48 = vpop.f32.mrf.mxu0 }
 0x9c3   : > { %v4004_v6 = vadd.f32 %v4758_v39, %v3986_v45  ;;  %v3981_v27 = vadd.f32 %v4267_v15, %v3980_v48 }
 0x9c5   : > { %4012 = vst.msk [vmem:[#allocation2 + $0x28] sm:$0xff] %vm404_vm1, %v4004_v6  ;;  %v4003_v43 = vadd.f32 %v4759_v30, %v3981_v27 }
 0x9c7   : > { %4011 = vst.msk [vmem:[#allocation2 + $0x20] sm:$0xff] %vm404_vm1, %v4003_v43 }
 0x9cd   : > { %v4563_v14 = vpop.f32.mrf.mxu0 }
 0x9ce   : > { %v3996_v24 = vadd.f32 %v4563_v14, %v4267_v15 }
 0x9cf   : > { %v3990_v25 = vpop.f32.mrf.mxu0 }
 0x9d0   : > { %v4006_v26 = vadd.f32 %v4760_v0, %v3996_v24  ;;  %v3991_v34 = vadd.f32 %v4267_v15, %v3990_v25  ;;  %4018 = sbr.rel (%p4276_p8) target bundleno = 2521 (0x9d9), region = 52 }
 0x9d2   : > { %4014 = vst.msk [vmem:[#allocation2 + $0x38] sm:$0xff] %vm404_vm1, %v4006_v26  ;;  %v4005_v42 = vadd.f32 %v4761_v16, %v3991_v34 }
 0x9d4   : > { %4013 = vst.msk [vmem:[#allocation2 + $0x30] sm:$0xff] %vm404_vm1, %v4005_v42 }
 0x9d5   : > { %4019 = vst.msk [vmem:[%s4919_s13] sm:$0xff] %vm404_vm1, %v3999_v49  ;;  %4020 = vst.msk [vmem:[%s4919_s13 + $0x8] sm:$0xff] %vm404_vm1, %v4000_v32 }
 0x9d6   : > { %4021 = vst.msk [vmem:[%s4919_s13 + $0x10] sm:$0xff] %vm404_vm1, %v4001_v3  ;;  %4022 = vst.msk [vmem:[%s4919_s13 + $0x18] sm:$0xff] %vm404_vm1, %v4002_v41 }
 0x9d7   : > { %4023 = vst.msk [vmem:[%s4919_s13 + $0x20] sm:$0xff] %vm404_vm1, %v4003_v43  ;;  %4024 = vst.msk [vmem:[%s4919_s13 + $0x28] sm:$0xff] %vm404_vm1, %v4004_v6 }
 0x9d8   : > { %4025 = vst.msk [vmem:[%s4919_s13 + $0x30] sm:$0xff] %vm404_vm1, %v4005_v42  ;;  %4026 = vst.msk [vmem:[%s4919_s13 + $0x38] sm:$0xff] %vm404_vm1, %v4006_v26 }
 0x9d9 PF: > { %s16_s25 = sadd.s32 1, %s4800_s25   ;;  %s6481_s0 = sld [smem:[#allocation3_spill]] }
 0x9da   : > { %p13_p9 = scmp.ge.s32.totalorder %s16_s25, 6   ;;  %s6482_s21 = smov %s4792_s23 }
 0x9db   : > { %s6483_s22 = smov %s4796_s24  ;;  %s6484_s23 = smov %s6487_s26 }
 0x9dc   :  { %15 = sbr.rel (!%p13_p9) target bundleno = 4 (0x4), region = 97 }
 0x9df   : > { %s6485_s24 = smov %s6481_s0 }

</bundles_post_ra>
